<compile_context>
chip_gen: v7x
topology: tpu7x:2x2x1
jax: 0.10.0
libtpu: 0.0.40
codegen_flags: <defaults>
</compile_context>

<pallas_src>
import jax
import jax.numpy as jnp
from jax import lax
from jax.experimental import pallas as pl
from jax.experimental.pallas import tpu as pltpu


_HIGHEST = lax.Precision.HIGHEST


def _round_up(x, m):
    return ((x + m - 1) // m) * m


def _pad_to(x, shape):
    """Zero-pad `x` up to `shape` (no-op when already that shape)."""
    if tuple(x.shape) == tuple(shape):
        return x
    return jnp.pad(x, [(0, t - s) for s, t in zip(x.shape, shape)])


def _attention_kernel(inp_ref, src_ref, srct_ref, bias_ref,
                      wp_ref, wmix_ref, winp_ref,
                      out_ref, attn_ref):
    # inp_ref : (1, TQ, Din_p)       src_ref : (1, S_p, Dsrc_p)
    # srct_ref: (1, Dsrc_p, S_p)     bias_ref: (1, S_p)   f32 additive mask
    # wp_ref  : (Din_p, Dsrc_p)      wmix_ref: (Dsrc_p, Dout_p)
    # winp_ref: (Din_p, Dout_p)
    # out_ref : (1, TQ, Dout_p)      attn_ref: (1, TQ, S_p)
    x = inp_ref[0]                       # (TQ, Din_p), native dtype
    src = src_ref[0]                     # (S_p, Dsrc_p)
    src_t = srct_ref[0]                  # (Dsrc_p, S_p)

    # x_proj = input_proj(input)                         (TQ, Dsrc_p)
    x_proj = jnp.dot(x, wp_ref[...],
                     preferred_element_type=jnp.float32, precision=_HIGHEST)

    # scores = x_proj @ source_hids^T via the pre-transposed copy (TQ, S_p)
    scores = jnp.dot(x_proj.astype(src_t.dtype), src_t,
                     preferred_element_type=jnp.float32, precision=_HIGHEST)
    scores = scores + bias_ref[...]      # additive padding mask (broadcast row)

    # softmax over the source axis (f32 statistics, exact reciprocal)
    m = jnp.max(scores, axis=-1, keepdims=True)
    e = jnp.exp(scores - m)
    attn = e / jnp.sum(e, axis=-1, keepdims=True)          # (TQ, S_p)

    # mix = attn @ source_hids                            (TQ, Dsrc_p)
    mix = jnp.dot(attn.astype(src.dtype), src,
                  preferred_element_type=jnp.float32, precision=_HIGHEST)

    # output = tanh(cat([mix, input]) @ W_out^T) fused as two dots
    # against the mix-half and input-half of the output weight (no scratch).
    pre = (jnp.dot(mix.astype(wmix_ref.dtype), wmix_ref[...],
                   preferred_element_type=jnp.float32, precision=_HIGHEST)
           + jnp.dot(x, winp_ref[...],
                     preferred_element_type=jnp.float32, precision=_HIGHEST))

    out_ref[0] = jnp.tanh(pre).astype(out_ref.dtype)
    attn_ref[0] = attn.astype(attn_ref.dtype)


def attention_forward(inp, source_hids, w_input_proj, w_output_proj):
    """
    inp:            (B, T, input_dim)
    source_hids:    (B, S, source_dim)
    w_input_proj:   (source_dim, input_dim)              -- PyTorch Linear layout
    w_output_proj:  (output_dim, input_dim + source_dim) -- cols: [mix | input]

    Returns (output (B, T, output_dim), attn (B, T, S)).
    """
    B, T, Din = inp.shape
    Bs, S, Dsrc = source_hids.shape
    assert Bs == B
    Dout, Dcat = w_output_proj.shape
    assert Dcat == Din + Dsrc
    assert w_input_proj.shape == (Dsrc, Din)

    itemsize = jnp.dtype(inp.dtype).itemsize
    sublane = max(8, 32 // itemsize)          # 8 f32, 16 bf16, 32 int8/fp8

    # Lane-dense padding (multiples of 128) + query-row tiling.
    Din_p = _round_up(Din, 128)
    Dsrc_p = _round_up(Dsrc, 128)
    Dout_p = _round_up(Dout, 128)
    S_p = _round_up(S, 128)
    TQ = min(128, _round_up(T, sublane))      # 128 keeps f32 temporaries v7x-safe
    T_p = _round_up(T, TQ)

    # Zero-pad activations only when actually unaligned.
    inp_p = _pad_to(inp, (B, T_p, Din_p))
    src_p = _pad_to(source_hids, (B, S_p, Dsrc_p))
    srct_p = jnp.swapaxes(src_p, 1, 2)        # (B, Dsrc_p, S_p), once per call

    # Additive softmax bias: 0 for valid source positions, -1e30 for padding.
    bias = jnp.where(jnp.arange(S_p) < S, 0.0, -1e30).astype(jnp.float32)[None, :]

    # Pre-transposed, zero-padded weights -> plain row-major dots in the kernel.
    wp = _pad_to(jnp.transpose(w_input_proj), (Din_p, Dsrc_p))
    wmix = _pad_to(jnp.transpose(w_output_proj[:, :Dsrc]), (Dsrc_p, Dout_p))
    winp = _pad_to(jnp.transpose(w_output_proj[:, Dsrc:]), (Din_p, Dout_p))

    grid = (B, T_p // TQ)

    # Explicit scoped-VMEM limit sized from the actual per-step footprint.
    act_bytes = 2 * (TQ * Din_p + S_p * Dsrc_p + Dsrc_p * S_p
                     + TQ * Dout_p + TQ * S_p) * itemsize       # dbl-buffered
    weight_bytes = 2 * (Din_p * Dsrc_p + Dsrc_p * Dout_p + Din_p * Dout_p) * itemsize
    f32_tmp_bytes = (3 * TQ * S_p + TQ * Dsrc_p + 2 * TQ * Dout_p + S_p) * 4
    vmem_need = act_bytes + weight_bytes + f32_tmp_bytes
    vmem_limit = int(min(max(2 * vmem_need, 32 * 1024 * 1024), 100 * 1024 * 1024))

    flops = int(2 * B * T_p * (Din_p * Dsrc_p + 2 * Dsrc_p * S_p
                               + Dsrc_p * Dout_p + Din_p * Dout_p))
    transcendentals = int(B * T_p * (S_p + Dout_p))
    bytes_accessed = int(
        (inp_p.size + src_p.size + srct_p.size
         + wp.size + wmix.size + winp.size) * itemsize
        + bias.size * 4
        + B * T_p * (Dout_p + S_p) * itemsize)

    out_p, attn_p = pl.pallas_call(
        _attention_kernel,
        out_shape=(jax.ShapeDtypeStruct((B, T_p, Dout_p), inp.dtype),
                   jax.ShapeDtypeStruct((B, T_p, S_p), inp.dtype)),
        grid_spec=pltpu.PrefetchScalarGridSpec(
            num_scalar_prefetch=0,
            grid=grid,
            in_specs=[
                pl.BlockSpec((1, TQ, Din_p), lambda b, t: (b, t, 0)),
                pl.BlockSpec((1, S_p, Dsrc_p), lambda b, t: (b, 0, 0)),
                pl.BlockSpec((1, Dsrc_p, S_p), lambda b, t: (b, 0, 0)),
                pl.BlockSpec((1, S_p), lambda b, t: (0, 0)),
                pl.BlockSpec((Din_p, Dsrc_p), lambda b, t: (0, 0)),
                pl.BlockSpec((Dsrc_p, Dout_p), lambda b, t: (0, 0)),
                pl.BlockSpec((Din_p, Dout_p), lambda b, t: (0, 0)),
            ],
            out_specs=[
                pl.BlockSpec((1, TQ, Dout_p), lambda b, t: (b, t, 0)),
                pl.BlockSpec((1, TQ, S_p), lambda b, t: (b, t, 0)),
            ],
        ),
        compiler_params=pltpu.CompilerParams(
            dimension_semantics=("parallel", "parallel"),
            vmem_limit_bytes=vmem_limit),
        cost_estimate=pl.CostEstimate(
            flops=flops, transcendentals=transcendentals,
            bytes_accessed=bytes_accessed),
    )(inp_p, src_p, srct_p, bias, wp, wmix, winp)

    # Strip padding only when it was applied.
    out = out_p if (T_p, Dout_p) == (T, Dout) else out_p[:, :T, :Dout]
    attn = attn_p if (T_p, S_p) == (T, S) else attn_p[:, :T, :S]
    return out, attn


def attention_reference(inp, source_hids, w_input_proj, w_output_proj):
    """Pure-JAX reference mirroring the PyTorch module (HIGHEST precision)."""
    x = jnp.einsum('btd,sd->bts', inp, w_input_proj, precision='highest')
    attn = jnp.einsum('bts,bks->btk', x, source_hids, precision='highest')
    attn = jax.nn.softmax(attn, axis=-1)
    mix = jnp.einsum('btk,bks->bts', attn, source_hids, precision='highest')
    combined = jnp.concatenate([mix, inp], axis=-1)
    output = jnp.tanh(jnp.einsum('btc,oc->bto', combined, w_output_proj,
                                 precision='highest'))
    return output, attn


if __name__ == "__main__":
    # Small, heterogeneous shapes to also exercise the mix/input weight split
    # and the source-axis padding mask.
    B, T, S = 2, 8, 10
    input_dim, source_dim, output_dim = 32, 48, 24

    key = jax.random.PRNGKey(0)
    k1, k2, k3, k4 = jax.random.split(key, 4)

    inp = jax.random.normal(k1, (B, T, input_dim), dtype=jnp.float32)
    source_hids = jax.random.normal(k2, (B, S, source_dim), dtype=jnp.float32)

    # Deterministic parameter init (bias=False in the module defaults).
    w_input_proj = 0.1 * jax.random.normal(
        k3, (source_dim, input_dim), dtype=jnp.float32)
    w_output_proj = 0.1 * jax.random.normal(
        k4, (output_dim, input_dim + source_dim), dtype=jnp.float32)

    out, attn = attention_forward(inp, source_hids, w_input_proj, w_output_proj)
    jax.block_until_ready((out, attn))

    out_ref, attn_ref = attention_reference(
        inp, source_hids, w_input_proj, w_output_proj)

    assert out.shape == (B, T, output_dim)
    assert attn.shape == (B, T, S)
    assert bool(jnp.allclose(out, out_ref, atol=2e-3, rtol=2e-3)), (
        "max |out - out_ref| = %g" % float(jnp.max(jnp.abs(out - out_ref))))
    assert bool(jnp.allclose(attn, attn_ref, atol=2e-3, rtol=2e-3)), (
        "max |attn - attn_ref| = %g" % float(jnp.max(jnp.abs(attn - attn_ref))))

    print("KERNEL_OK")
</pallas_src>

<mosaic_0001>
module attributes {stable_mosaic.version = 11 : i64} {
  func.func @_attention_kernel(%arg0: i32, %arg1: i32, %arg2: memref<1x8x128xf32, #tpu.memory_space<vmem>>, %arg3: memref<1x128x128xf32, #tpu.memory_space<vmem>>, %arg4: memref<1x128x128xf32, #tpu.memory_space<vmem>>, %arg5: memref<1x128xf32, #tpu.memory_space<vmem>>, %arg6: memref<128x128xf32, #tpu.memory_space<vmem>>, %arg7: memref<128x128xf32, #tpu.memory_space<vmem>>, %arg8: memref<128x128xf32, #tpu.memory_space<vmem>>, %arg9: memref<1x8x128xf32, #tpu.memory_space<vmem>>, %arg10: memref<1x8x128xf32, #tpu.memory_space<vmem>>) attributes {dimension_semantics = [#tpu.dimension_semantics<parallel>, #tpu.dimension_semantics<parallel>], iteration_bounds = array<i64: 2, 1>, scalar_prefetch = 0 : i64, scratch_operands = 0 : i64, tpu.core_type = #tpu.core_type<tc>, window_params = [{transform_indices = @transform_0, window_bounds = array<i64: 1, 8, 128>}, {transform_indices = @transform_1, window_bounds = array<i64: 1, 128, 128>}, {transform_indices = @transform_2, window_bounds = array<i64: 1, 128, 128>}, {pipeline_mode = #tpu.pipeline_mode<synchronous>, transform_indices = @transform_3, window_bounds = array<i64: 1, 128>}, {pipeline_mode = #tpu.pipeline_mode<synchronous>, transform_indices = @transform_4, window_bounds = array<i64: 128, 128>}, {pipeline_mode = #tpu.pipeline_mode<synchronous>, transform_indices = @transform_5, window_bounds = array<i64: 128, 128>}, {pipeline_mode = #tpu.pipeline_mode<synchronous>, transform_indices = @transform_6, window_bounds = array<i64: 128, 128>}, {transform_indices = @transform_7, window_bounds = array<i64: 1, 8, 128>}, {transform_indices = @transform_8, window_bounds = array<i64: 1, 8, 128>}]} {
    %c0 = arith.constant 0 : index
    %c0_0 = arith.constant 0 : index
    %c0_1 = arith.constant 0 : index
    %0 = vector.load %arg2[%c0, %c0_0, %c0_1] : memref<1x8x128xf32, #tpu.memory_space<vmem>>, vector<1x8x128xf32>
    %1 = vector.shape_cast %0 : vector<1x8x128xf32> to vector<8x128xf32>
    %c0_2 = arith.constant 0 : index
    %c0_3 = arith.constant 0 : index
    %c0_4 = arith.constant 0 : index
    %2 = vector.load %arg3[%c0_2, %c0_3, %c0_4] : memref<1x128x128xf32, #tpu.memory_space<vmem>>, vector<1x128x128xf32>
    %3 = vector.shape_cast %2 : vector<1x128x128xf32> to vector<128x128xf32>
    %c0_5 = arith.constant 0 : index
    %c0_6 = arith.constant 0 : index
    %c0_7 = arith.constant 0 : index
    %4 = vector.load %arg4[%c0_5, %c0_6, %c0_7] : memref<1x128x128xf32, #tpu.memory_space<vmem>>, vector<1x128x128xf32>
    %5 = vector.shape_cast %4 : vector<1x128x128xf32> to vector<128x128xf32>
    %c0_8 = arith.constant 0 : index
    %c0_9 = arith.constant 0 : index
    %6 = vector.load %arg6[%c0_8, %c0_9] : memref<128x128xf32, #tpu.memory_space<vmem>>, vector<128x128xf32>
    %cst = arith.constant dense<0.000000e+00> : vector<8x128xf32>
    %7 = tpu.matmul %1, %6, %cst {dimension_numbers = #tpu.dot_dimension_numbers<[1], [0], [0], [1], [0, 0, 1, 1], [], []>, precision = #tpu.contract_precision<fp32>} : vector<8x128xf32>, vector<128x128xf32>, vector<8x128xf32> -> vector<8x128xf32>
    %cst_10 = arith.constant dense<0.000000e+00> : vector<8x128xf32>
    %8 = tpu.matmul %7, %5, %cst_10 {dimension_numbers = #tpu.dot_dimension_numbers<[1], [0], [0], [1], [0, 0, 1, 1], [], []>, precision = #tpu.contract_precision<fp32>} : vector<8x128xf32>, vector<128x128xf32>, vector<8x128xf32> -> vector<8x128xf32>
    %c0_11 = arith.constant 0 : index
    %c0_12 = arith.constant 0 : index
    %9 = vector.load %arg5[%c0_11, %c0_12] : memref<1x128xf32, #tpu.memory_space<vmem>>, vector<1x128xf32>
    %10 = vector.broadcast %9 : vector<1x128xf32> to vector<8x128xf32>
    %11 = arith.addf %8, %10 : vector<8x128xf32>
    %cst_13 = arith.constant dense<0xFF800000> : vector<8xf32>
    %12 = vector.multi_reduction <maximumf>, %11, %cst_13 [1] : vector<8x128xf32> to vector<8xf32>
    %13 = vector.shape_cast %12 : vector<8xf32> to vector<8x1xf32>
    %14 = vector.broadcast %13 : vector<8x1xf32> to vector<8x128xf32>
    %15 = arith.subf %11, %14 : vector<8x128xf32>
    %16 = math.exp %15 : vector<8x128xf32>
    %cst_14 = arith.constant dense<0.000000e+00> : vector<8xf32>
    %17 = vector.multi_reduction <add>, %16, %cst_14 [1] : vector<8x128xf32> to vector<8xf32>
    %18 = vector.shape_cast %17 : vector<8xf32> to vector<8x1xf32>
    %19 = vector.broadcast %18 : vector<8x1xf32> to vector<8x128xf32>
    %20 = arith.divf %16, %19 : vector<8x128xf32>
    %cst_15 = arith.constant dense<0.000000e+00> : vector<8x128xf32>
    %21 = tpu.matmul %20, %3, %cst_15 {dimension_numbers = #tpu.dot_dimension_numbers<[1], [0], [0], [1], [0, 0, 1, 1], [], []>, precision = #tpu.contract_precision<fp32>} : vector<8x128xf32>, vector<128x128xf32>, vector<8x128xf32> -> vector<8x128xf32>
    %c0_16 = arith.constant 0 : index
    %c0_17 = arith.constant 0 : index
    %22 = vector.load %arg7[%c0_16, %c0_17] : memref<128x128xf32, #tpu.memory_space<vmem>>, vector<128x128xf32>
    %cst_18 = arith.constant dense<0.000000e+00> : vector<8x128xf32>
    %23 = tpu.matmul %21, %22, %cst_18 {dimension_numbers = #tpu.dot_dimension_numbers<[1], [0], [0], [1], [0, 0, 1, 1], [], []>, precision = #tpu.contract_precision<fp32>} : vector<8x128xf32>, vector<128x128xf32>, vector<8x128xf32> -> vector<8x128xf32>
    %c0_19 = arith.constant 0 : index
    %c0_20 = arith.constant 0 : index
    %24 = vector.load %arg8[%c0_19, %c0_20] : memref<128x128xf32, #tpu.memory_space<vmem>>, vector<128x128xf32>
    %cst_21 = arith.constant dense<0.000000e+00> : vector<8x128xf32>
    %25 = tpu.matmul %1, %24, %cst_21 {dimension_numbers = #tpu.dot_dimension_numbers<[1], [0], [0], [1], [0, 0, 1, 1], [], []>, precision = #tpu.contract_precision<fp32>} : vector<8x128xf32>, vector<128x128xf32>, vector<8x128xf32> -> vector<8x128xf32>
    %26 = arith.addf %23, %25 : vector<8x128xf32>
    %27 = math.tanh %26 : vector<8x128xf32>
    %c0_22 = arith.constant 0 : index
    %c0_23 = arith.constant 0 : index
    %c0_24 = arith.constant 0 : index
    %28 = vector.load %arg9[%c0_22, %c0_23, %c0_24] : memref<1x8x128xf32, #tpu.memory_space<vmem>>, vector<1x8x128xf32>
    %29 = vector.shape_cast %28 : vector<1x8x128xf32> to vector<8x128xf32>
    %30 = vector.shape_cast %27 : vector<8x128xf32> to vector<1x8x128xf32>
    tpu.vector_store %arg9[%c0_22, %c0_23, %c0_24], %30 {strides = array<i32>} : memref<1x8x128xf32, #tpu.memory_space<vmem>>, vector<1x8x128xf32>,
    %c0_25 = arith.constant 0 : index
    %c0_26 = arith.constant 0 : index
    %c0_27 = arith.constant 0 : index
    %31 = vector.load %arg10[%c0_25, %c0_26, %c0_27] : memref<1x8x128xf32, #tpu.memory_space<vmem>>, vector<1x8x128xf32>
    %32 = vector.shape_cast %31 : vector<1x8x128xf32> to vector<8x128xf32>
    %33 = vector.shape_cast %20 : vector<8x128xf32> to vector<1x8x128xf32>
    tpu.vector_store %arg10[%c0_25, %c0_26, %c0_27], %33 {strides = array<i32>} : memref<1x8x128xf32, #tpu.memory_space<vmem>>, vector<1x8x128xf32>,
    return
  }
  func.func @transform_0(%arg0: i32, %arg1: i32) -> (i32, i32, i32) {
    %c0_i32 = arith.constant 0 : i32
    %c0_i32_0 = arith.constant 0 : i32
    return %arg0, %arg1, %c0_i32 : i32, i32, i32
  }
  func.func @transform_1(%arg0: i32, %arg1: i32) -> (i32, i32, i32) {
    %c0_i32 = arith.constant 0 : i32
    %c0_i32_0 = arith.constant 0 : i32
    %c0_i32_1 = arith.constant 0 : i32
    return %arg0, %c0_i32, %c0_i32_0 : i32, i32, i32
  }
  func.func @transform_2(%arg0: i32, %arg1: i32) -> (i32, i32, i32) {
    %c0_i32 = arith.constant 0 : i32
    %c0_i32_0 = arith.constant 0 : i32
    %c0_i32_1 = arith.constant 0 : i32
    return %arg0, %c0_i32, %c0_i32_0 : i32, i32, i32
  }
  func.func @transform_3(%arg0: i32, %arg1: i32) -> (i32, i32) {
    %c0_i32 = arith.constant 0 : i32
    %c0_i32_0 = arith.constant 0 : i32
    %c0_i32_1 = arith.constant 0 : i32
    return %c0_i32, %c0_i32_0 : i32, i32
  }
  func.func @transform_4(%arg0: i32, %arg1: i32) -> (i32, i32) {
    %c0_i32 = arith.constant 0 : i32
    %c0_i32_0 = arith.constant 0 : i32
    %c0_i32_1 = arith.constant 0 : i32
    return %c0_i32, %c0_i32_0 : i32, i32
  }
  func.func @transform_5(%arg0: i32, %arg1: i32) -> (i32, i32) {
    %c0_i32 = arith.constant 0 : i32
    %c0_i32_0 = arith.constant 0 : i32
    %c0_i32_1 = arith.constant 0 : i32
    return %c0_i32, %c0_i32_0 : i32, i32
  }
  func.func @transform_6(%arg0: i32, %arg1: i32) -> (i32, i32) {
    %c0_i32 = arith.constant 0 : i32
    %c0_i32_0 = arith.constant 0 : i32
    %c0_i32_1 = arith.constant 0 : i32
    return %c0_i32, %c0_i32_0 : i32, i32
  }
  func.func @transform_7(%arg0: i32, %arg1: i32) -> (i32, i32, i32) {
    %c0_i32 = arith.constant 0 : i32
    %c0_i32_0 = arith.constant 0 : i32
    return %arg0, %arg1, %c0_i32 : i32, i32, i32
  }
  func.func @transform_8(%arg0: i32, %arg1: i32) -> (i32, i32, i32) {
    %c0_i32 = arith.constant 0 : i32
    %c0_i32_0 = arith.constant 0 : i32
    return %arg0, %arg1, %c0_i32 : i32, i32, i32
  }
}

</mosaic_0001>

<bundles_post_ra>
// kernel: tpu_custom_call.1
= control target key start
LH: loop header
LB: loop body
LE: loop exit
PB: predicated region body
PF: predicated region fallthrough
CT: control target
= control target key end

     0   :  { %s8590_s0 = inlined_call_operand.hbm [shape: f32[2,8,128], index: 0, kind: input, shape index: {}]   ;;  %s8591_s1 = inlined_call_operand.hbm [shape: f32[2,128,128], index: 1, kind: input, shape index: {}]   ;;  %s8592_s2 = inlined_call_operand.hbm [shape: f32[2,128,128], index: 2, kind: input, shape index: {}]   ;;  %s8593_s3 = inlined_call_operand.vmem [shape: f32[1,128], index: 3, kind: input, shape index: {}]   ;;  %s8594_s4 = inlined_call_operand.hbm [shape: f32[128,128], index: 4, kind: input, shape index: {}]   ;;  %s8595_s5 = inlined_call_operand.hbm [shape: f32[128,128], index: 5, kind: input, shape index: {}]   ;;  %s8596_s6 = inlined_call_operand.hbm [shape: f32[128,128], index: 6, kind: input, shape index: {}]   ;;  %s8597_s7 = inlined_call_operand.hbm [shape: f32[2,8,128], index: 7, kind: output, shape index: {0}]   ;;  %s8598_s8 = inlined_call_operand.hbm [shape: f32[2,8,128], index: 8, kind: output, shape index: {1}]  }
   0x1   :  { %8685 = sst [smem:[#allocation51_spill]] %s8591_s1 }
   0x2   :  { %8686 = sst [smem:[#allocation52_spill]] %s8593_s3 }
   0x3   :  { %8687 = sst [smem:[#allocation53_spill]] %s8594_s4 }
   0x4   :  { %8688 = sst [smem:[#allocation54_spill]] %s8597_s7 }
   0x5   :  { %8689 = sst [smem:[#allocation55_spill]] %s8598_s8 }
   0x6   :  { %14 = vsyncpa [#allocation3], 0 }
   0x7   :  { %16 = vsyncpa [#allocation3 + $0x1], 0 }
   0x8   :  { %17 = vsyncpa [#allocation6], 0 }
   0x9   :  { %19 = vsyncpa [#allocation6 + $0x1], 0 }
   0xa   :  { %20 = vsyncpa [#allocation9], 0 }
   0xb   :  { %21 = vsyncpa [#allocation12], 0 }
   0xc   :  { %22 = vsyncpa [#allocation4], 0 }
   0xd   :  { %24 = vsyncpa [#allocation4 + $0x1], 0 }
   0xe   :  { %25 = vsyncpa [#allocation15], 0 }
   0xf   :  { %27 = vsyncpa [#allocation15 + $0x1], 0  ;;  %s6840_s27 = smov 0   ;;  %s6842_s28 = smov 0  }
  0x10   :  { %s6844_s29 = smov 0   ;;  %s6846_s30 = smov 0  }
  0x11   :  { %s6848_s9 = smov 0   ;;  %s6850_s10 = smov 0  }
  0x12 LB: > { %8690 = sst [smem:[#allocation22_spill]] %s6760_s27  ;;  %s6871_s11 = sadd.s32 4294967295, %s6780_s10   ;;  %s6780_s10 = sphi %s6850_s10, %s33_s10   ;;  %s6776_s9 = sphi %s6848_s9, %s8819_s9   ;;  %s6772_s30 = sphi %s6846_s30, %s8818_s30   ;;  %s6768_s29 = sphi %s6844_s29, %s8817_s29   ;;  %s6764_s28 = sphi %s6842_s28, %s8816_s28   ;;  %s6760_s27 = sphi %s6840_s27, %s8815_s27  }
  0x13   : > { %8691 = sst [smem:[#allocation23_spill]] %s6768_s29  ;;  %s3997_s12 = sadd.s32 4294967294, %s6780_s10  }
  0x14   : > { %8692 = sst [smem:[#allocation24_spill]] %s6772_s30  ;;  %p61_p0 = scmp.ne.s32.totalorder %s6768_s29, %s6764_s28 }
  0x15   : > { %8693 = sst [smem:[#allocation25_spill]] %s6780_s10  ;;  %p62_p1 = scmp.eq.s32.totalorder %s6780_s10, 0 }
  0x16   : > { %p67_p2 = scmp.ne.s32.totalorder %s6764_s28, %s6760_s27  ;;  %p8602_p3 = scmp.eq.s32.totalorder %s6871_s11, 0 }
  0x17   : > { %p229_p4 = scmp.eq.s32.totalorder %s6871_s11, 1  ;;  %p6882_p5 = por %p62_p1, %p61_p0 }
  0x18   : > { %p235_p6 = scmp.eq.s32.totalorder %s3997_s12, 1  ;;  %p6888_p7 = por %p8602_p3, %p67_p2 }
  0x19   : > { %p6892_p8 = por %p229_p4, %p61_p0  ;;  %p3998_p10 = scmp.ge.s32.totalorder %s6780_s10, 1 }
  0x1a   : > { %s8695_s15 = scalar_select %p6888_p7, 1, 0 }
  0x1b   : > { %s8696_s16 = scalar_select %p6892_p8, 1, 0 }
  0x1c   : > { %p6896_p9 = por %p235_p6, %p67_p2  ;;  %p270_p11 = scmp.lt.s32.totalorder %s6780_s10, 3 }
  0x1d   : > { %8697 = sst [smem:[#allocation26_spill]] %s8696_s16  ;;  %s6782_s19 = smov [#allocation8]  }
  0x1e   : > { %s8698_s17 = scalar_select %p6896_p9, 1, 0 }
  0x1f   : > { %p6902_p12 = pnand %p3998_p10, %p270_p11  ;;  %s285_s20 = sshll.u32 %s6782_s19, 4  ;;  %s6906_s20 = int_to_ptr.vmem [resolvable:$true] %s285_s20 }
  0x20   : > { %8699 = sst [smem:[#allocation27_spill]] %s8698_s17  ;;  %s45_s22 = sadd.s32 1, %s6776_s9 }
  0x21   : > { %s8700_s18 = scalar_select %p6902_p12, 1, 0 }
  0x22   : > { %p6383_p13 = pneg %p6902_p12  ;;  %s6920_s23 = sand.u32 1, %s6768_s29  }
  0x23   : > { %p6922_p4 = scmp.ge.s32.totalorder %s45_s22, 2  ;;  %s8703_s4 = sld [smem:[#allocation53_spill]] }
  0x24   : > { %p6914_p2 = pnand %p6383_p13, %p8602_p3 }
  0x26   : > { %s8701_s21 = scalar_select %p6914_p2, 1, 0 }
  0x27   : > { %p6934_p10 = pneg %p6914_p2 }
  0x29   : > { %s6480_s12 = scalar_lea.hbm %s8703_s4, 2048 }
  0x2a   : > { %p6481_p6 = scmp.ne.s32.totalorder %s8703_s4, %s6480_s12  ;;  %p6487_p0 = scmp.lt.u32.totalorder %s6480_s12, %s8703_s4 }
  0x2b   : > { %s8704_s17 = scalar_select %p6934_p10, 1, 0 }
  0x2c   : > { %p6483_p11 = pnand %p6934_p10, %p6481_p6 }
  0x2e   : > { %p6484_p13 = pneg %p6483_p11 }
  0x30   : > { %p6489_p3 = pnand %p6487_p0, %p6484_p13 }
  0x32   : > { %6492 = shalt.err (!%p6489_p3)
}
  0x33   : > { %s6493_s13 = scalar_lea.vmem %s6906_s20, 2048  ;;  %p6501_p7 = scmp.lt.s32.totalorder %s6906_s20, %s6906_s20 }
  0x34   : > { %p6494_p1 = scmp.ne.s32.totalorder %s6906_s20, %s6493_s13  ;;  %p6502_p12 = scmp.lt.s32.totalorder %s6493_s13, %s6493_s13 }
  0x36   : > { %p6496_p9 = pnand %p6494_p1, %p6934_p10  ;;  %p6503_p6 = por %p6502_p12, %p6501_p7 }
  0x38   : > { %p6497_p8 = pneg %p6496_p9 }
  0x3a   : > { %p6504_p11 = pnand %p6503_p6, %p6497_p8 }
  0x3c   : > { %6507 = shalt.err (!%p6504_p11)
}
  0x3d   : > { %s8610_s25 = smov 128   ;;  %s8612_s7 = smov 8  }
  0x3e   : > { %6386 = dma.hbm_to_vmem [thread:$0]  (!%p6914_p2), %s8703_s4, 2048, %s6906_s20, [#allocation9], %s8610_s25, %s8610_s25, %s8612_s7  }
  0x3f   : > { %s8821_s22 = smov (%p6922_p4, %s45_s22), 0  ;;  %p8706_p3 = scmp.lt.s32.totalorder %s6780_s10, 2 }
  0x40   : > { %8705 = sst [smem:[#allocation28_spill]] %s8821_s22  ;;  %s344_s19 = sand.u32 1, %s6780_s10  }
  0x41   : > { %p6966_p7 = pnand %p8706_p3, %p6882_p5  ;;  %s49_s13 = ssub.s32 %s6776_s9, %s8821_s22 }
  0x42   : > { %p52_p8 = scmp.eq.s32.totalorder %s49_s13, 0  ;;  %s8614_s8 = sshll.u32 %s6920_s23, 7 }
  0x43   : > { %s8707_s12 = scalar_select %p6966_p7, 1, 0 }
  0x44   : > { %s4027_s16 = sshll.u32 %s6776_s9, 11  ;;  %s8708_s30 = sadd.s32 1, %s6768_s29 }
  0x45   : > { %s6978_s3 = scalar_select %p52_p8, %s6768_s29, %s8708_s30  }
  0x46   : > { %s8710_s1 = sld [smem:[#allocation51_spill]]  ;;  %s348_s14 = scalar_lea.vmem [#allocation5], %s8614_s8 }
  0x47   : > { %8709 = sst [smem:[#allocation29_spill]] %s6978_s3  ;;  %s355_s26 = sshll.u32 %s348_s14, 4  ;;  %s6987_s26 = int_to_ptr.vmem [resolvable:$true] %s355_s26 }
  0x48   : > { %s6992_s7 = scalar_lea.hbm %s8592_s2, %s4027_s16  ;;  %s6994_s30 = scalar_lea.sflag [#allocation6], %s344_s19 }
  0x49   : > { %p7000_p9 = pneg %p6966_p7 }
  0x4b   : > { %s8711_s20 = scalar_select %p7000_p9, 1, 0 }
  0x4c   : > { %s6983_s27 = scalar_lea.hbm %s8710_s1, %s4027_s16  ;;  %s6513_s8 = scalar_lea.hbm %s8710_s1, 4096 }
  0x4d   : > { %s6508_s4 = scalar_lea.hbm %s6983_s27, 2048  ;;  %p6514_p1 = scmp.lt.u32.totalorder %s6983_s27, %s8710_s1 }
  0x4e   : > { %p6509_p5 = scmp.ne.s32.totalorder %s6983_s27, %s6508_s4  ;;  %p6515_p4 = scmp.lt.u32.totalorder %s6513_s8, %s6508_s4 }
  0x4f   : > { %p6517_p6 = scmp.lt.u32.totalorder %s6508_s4, %s6983_s27 }
  0x50   : > { %p6511_p12 = pnand %p7000_p9, %p6509_p5  ;;  %p6516_p13 = por %p6515_p4, %p6514_p1 }
  0x52   : > { %p6512_p0 = pneg %p6511_p12  ;;  %p6518_p11 = por %p6517_p6, %p6516_p13 }
  0x54   : > { %p6519_p3 = pnand %p6518_p11, %p6512_p0 }
  0x56   : > { %6522 = shalt.err (!%p6519_p3)
}
  0x57   : > { %s6523_s19 = scalar_lea.vmem %s6987_s26, 2048  ;;  %s6785_s13 = smov [#allocation5]  }
  0x58   : > { %p6524_p8 = scmp.ne.s32.totalorder %s6987_s26, %s6523_s19  ;;  %s6528_s24 = sshll.u32 %s6785_s13, 4  ;;  %s6529_s24 = int_to_ptr.vmem [resolvable:$false] %s6528_s24 }
  0x59   : > { %s6530_s14 = scalar_lea.vmem %s6529_s24, 4096  ;;  %p6531_p2 = scmp.lt.s32.totalorder %s6987_s26, %s6529_s24 }
  0x5a   : > { %p6526_p5 = pnand %p6524_p8, %p7000_p9  ;;  %p6532_p10 = scmp.lt.s32.totalorder %s6530_s14, %s6523_s19 }
  0x5c   : > { %p6527_p12 = pneg %p6526_p5  ;;  %p6533_p1 = por %p6532_p10, %p6531_p2 }
  0x5e   : > { %p6534_p4 = pnand %p6533_p1, %p6527_p12 }
  0x60   : > { %6537 = shalt.err (!%p6534_p4)
}
  0x61   : > { %s8712_s4 = smov 8   ;;  %s8713_s8 = smov 128  }
  0x62   : > { %6399 = dma.hbm_to_vmem [thread:$0]  (!%p6966_p7), %s6983_s27, 2048, %s6987_s26, %s6994_s30, %s8713_s8, %s8713_s8, %s8712_s4  }
  0x63   : > { %s8714_s25 = sshll.u32 %s6920_s23, 7  ;;  %s6786_s19 = smov [#allocation10]  }
  0x64   : > { %s369_s16 = scalar_lea.vmem [#allocation7], %s8714_s25  ;;  %s298_s24 = sshll.u32 %s6786_s19, 4  ;;  %s299_s24 = int_to_ptr.vmem [resolvable:$true] %s298_s24 }
  0x65   : > { %s376_s13 = sshll.u32 %s369_s16, 4  ;;  %s6538_s22 = scalar_lea.hbm %s8595_s5, 2048  ;;  %s7029_s13 = int_to_ptr.vmem [resolvable:$true] %s376_s13 }
  0x66   : > { %p6539_p2 = scmp.ne.s32.totalorder %s8595_s5, %s6538_s22  ;;  %p8715_p10 = scmp.ne.s32.totalorder %s8704_s17, 0 }
  0x67   : > { %p6545_p6 = scmp.lt.u32.totalorder %s6538_s22, %s8595_s5 }
  0x68   : > { %p6541_p0 = pnand %p6539_p2, %p8715_p10 }
  0x6a   : > { %p6542_p13 = pneg %p6541_p0 }
  0x6c   : > { %p6547_p11 = pnand %p6545_p6, %p6542_p13 }
  0x6e   : > { %6550 = shalt.err (!%p6547_p11)
}
  0x6f   : > { %s6551_s25 = scalar_lea.vmem %s299_s24, 2048  ;;  %p6559_p12 = scmp.lt.s32.totalorder %s299_s24, %s299_s24 }
  0x70   : > { %p6552_p3 = scmp.ne.s32.totalorder %s299_s24, %s6551_s25  ;;  %p6560_p1 = scmp.lt.s32.totalorder %s6551_s25, %s6551_s25 }
  0x72   : > { %p6554_p8 = pnand %p6552_p3, %p8715_p10  ;;  %p6561_p4 = por %p6560_p1, %p6559_p12 }
  0x74   : > { %p6555_p5 = pneg %p6554_p8 }
  0x76   : > { %p6562_p7 = pnand %p6561_p4, %p6555_p5 }
  0x78   : > { %6565 = shalt.err (!%p6562_p7)
}
  0x79   : > { %p8716_p2 = scmp.ne.s32.totalorder %s8701_s21, 0  ;;  %s6787_s29 = smov [#allocation11]  }
  0x7a   : > { %s311_s22 = sshll.u32 %s6787_s29, 4  ;;  %s4003_s16 = sshll.u32 %s6920_s23, 3  ;;  %s312_s22 = int_to_ptr.vmem [resolvable:$true] %s311_s22 }
  0x7b   : > { %6389 = dma.hbm_to_vmem [thread:$0]  (!%p8716_p2), %s8595_s5, 2048, %s299_s24, [#allocation9], %s8713_s8, %s8713_s8, %s8712_s4  }
  0x7c   : > { %s6566_s27 = scalar_lea.hbm %s8596_s6, 2048 }
  0x7d   : > { %p6567_p7 = scmp.ne.s32.totalorder %s8596_s6, %s6566_s27  ;;  %p6573_p6 = scmp.lt.u32.totalorder %s6566_s27, %s8596_s6 }
  0x7f   : > { %p6569_p0 = pnand %p6567_p7, %p8715_p10 }
  0x81   : > { %p6570_p13 = pneg %p6569_p0 }
  0x83   : > { %p6575_p11 = pnand %p6573_p6, %p6570_p13 }
  0x85   : > { %6578 = shalt.err (!%p6575_p11)
}
  0x86   : > { %s6579_s24 = scalar_lea.vmem %s312_s22, 2048  ;;  %p6587_p12 = scmp.lt.s32.totalorder %s312_s22, %s312_s22 }
  0x87   : > { %p6580_p3 = scmp.ne.s32.totalorder %s312_s22, %s6579_s24  ;;  %p6588_p1 = scmp.lt.s32.totalorder %s6579_s24, %s6579_s24 }
  0x89   : > { %p6582_p8 = pnand %p6580_p3, %p8715_p10  ;;  %p6589_p4 = por %p6588_p1, %p6587_p12 }
  0x8b   : > { %p6583_p5 = pneg %p6582_p8 }
  0x8d   : > { %p6590_p9 = pnand %p6589_p4, %p6583_p5 }
  0x8f   : > { %6593 = shalt.err (!%p6590_p9)
}
  0x90   : > { %6392 = dma.hbm_to_vmem [thread:$0]  (!%p8716_p2), %s8596_s6, 2048, %s312_s22, [#allocation12], %s8713_s8, %s8713_s8, %s8712_s4  }
  0x91   : > { %s4004_s17 = sshll.u32 %s6776_s9, 7  ;;  %s329_s21 = scalar_lea.vmem [#allocation2], %s4003_s16 }
  0x92   : > { %s7078_s14 = scalar_lea.hbm %s8590_s0, %s4004_s17  ;;  %s337_s27 = sshll.u32 %s329_s21, 4  ;;  %s338_s27 = int_to_ptr.vmem [resolvable:$true] %s337_s27 }
  0x93   : > { %s326_s26 = scalar_lea.sflag [#allocation3], %s6920_s23  ;;  %s6594_s25 = scalar_lea.hbm %s7078_s14, 128 }
  0x94   : > { %p6595_p9 = scmp.ne.s32.totalorder %s7078_s14, %s6594_s25  ;;  %p8717_p10 = scmp.ne.s32.totalorder %s8711_s20, 0 }
  0x95   : > { %s6599_s24 = scalar_lea.hbm %s8590_s0, 256  ;;  %p6600_p2 = scmp.lt.u32.totalorder %s7078_s14, %s8590_s0 }
  0x96   : > { %p6597_p7 = pnand %p6595_p9, %p8717_p10  ;;  %p6601_p13 = scmp.lt.u32.totalorder %s6599_s24, %s6594_s25 }
  0x97   : > { %p6603_p11 = scmp.lt.u32.totalorder %s6594_s25, %s7078_s14 }
  0x98   : > { %p6598_p0 = pneg %p6597_p7  ;;  %p6602_p6 = por %p6601_p13, %p6600_p2 }
  0x9a   : > { %p6604_p3 = por %p6603_p11, %p6602_p6 }
  0x9c   : > { %p6605_p8 = pnand %p6604_p3, %p6598_p0 }
  0x9e   : > { %6608 = shalt.err (!%p6605_p8)
}
  0x9f   : > { %s6609_s23 = scalar_lea.vmem %s338_s27, 128  ;;  %s6788_s16 = smov [#allocation2]  }
  0xa0   : > { %p6610_p5 = scmp.ne.s32.totalorder %s338_s27, %s6609_s23  ;;  %s6614_s17 = sshll.u32 %s6788_s16, 4  ;;  %s6615_s17 = int_to_ptr.vmem [resolvable:$false] %s6614_s17 }
  0xa1   : > { %s6616_s29 = scalar_lea.vmem %s6615_s17, 256  ;;  %p6617_p4 = scmp.lt.s32.totalorder %s338_s27, %s6615_s17 }
  0xa2   : > { %p6612_p12 = pnand %p6610_p5, %p8717_p10  ;;  %p6618_p9 = scmp.lt.s32.totalorder %s6616_s29, %s6609_s23 }
  0xa4   : > { %p6613_p1 = pneg %p6612_p12  ;;  %p6619_p7 = por %p6618_p9, %p6617_p4 }
  0xa6   : > { %p6620_p2 = pnand %p6619_p7, %p6613_p1 }
  0xa8   : > { %6623 = shalt.err (!%p6620_p2)
}
  0xa9   : > { %p8718_p13 = scmp.ne.s32.totalorder %s8707_s12, 0  ;;  %s6624_s19 = scalar_lea.hbm %s6992_s7, 2048 }
  0xaa   : > { %p6625_p0 = scmp.ne.s32.totalorder %s6992_s7, %s6624_s19  ;;  %s6629_s22 = scalar_lea.hbm %s8592_s2, 4096 }
  0xab   : > { %6396 = dma.hbm_to_vmem [thread:$0]  (!%p8718_p13), %s7078_s14, 128, %s338_s27, %s326_s26  }
  0xac   : > { %p6627_p6 = pnand %p6625_p0, %p8717_p10  ;;  %p6630_p3 = scmp.lt.u32.totalorder %s6992_s7, %s8592_s2 }
  0xad   : > { %p6631_p8 = scmp.lt.u32.totalorder %s6629_s22, %s6624_s19  ;;  %p6633_p12 = scmp.lt.u32.totalorder %s6624_s19, %s6992_s7 }
  0xae   : > { %p6628_p11 = pneg %p6627_p6 }
  0xaf   : > { %p6632_p5 = por %p6631_p8, %p6630_p3 }
  0xb1   : > { %p6634_p1 = por %p6633_p12, %p6632_p5 }
  0xb3   : > { %p6635_p4 = pnand %p6634_p1, %p6628_p11 }
  0xb5   : > { %6638 = shalt.err (!%p6635_p4)
}
  0xb6   : > { %s6639_s14 = scalar_lea.vmem %s7029_s13, 2048  ;;  %s6789_s27 = smov [#allocation7]  }
  0xb7   : > { %p6640_p9 = scmp.ne.s32.totalorder %s7029_s13, %s6639_s14  ;;  %s6644_s26 = sshll.u32 %s6789_s27, 4  ;;  %s6645_s26 = int_to_ptr.vmem [resolvable:$false] %s6644_s26 }
  0xb8   : > { %s6646_s10 = scalar_lea.vmem %s6645_s26, 4096  ;;  %p6647_p0 = scmp.lt.s32.totalorder %s7029_s13, %s6645_s26 }
  0xb9   : > { %p6642_p7 = pnand %p6640_p9, %p8717_p10  ;;  %p6648_p6 = scmp.lt.s32.totalorder %s6646_s10, %s6639_s14 }
  0xbb   : > { %p6643_p2 = pneg %p6642_p7  ;;  %p6649_p3 = por %p6648_p6, %p6647_p0 }
  0xbd   : > { %p6650_p8 = pnand %p6649_p3, %p6643_p2 }
  0xbf   : > { %6653 = shalt.err (!%p6650_p8)
}
  0xc0   : > { %6402 = dma.hbm_to_vmem [thread:$0]  (!%p8718_p13), %s6992_s7, 2048, %s7029_s13, %s6994_s30, %s8713_s8, %s8713_s8, %s8712_s4  }
  0xc1   : > { %p8719_p10 = scmp.ne.s32.totalorder %s8700_s18, 0 }
  0xc3   : > { %388 = sbr.rel (%p8719_p10) target bundleno = 2016 (0x7e0), region = 48 }
  0xca   : > { %s7126_s20 = sand.u32 1, %s6764_s28   ;;  %p8720_p11 = scmp.ne.s32.totalorder %s8695_s15, 0 }
  0xcb   : > { %s7129_s3 = sshll.u32 %s7126_s20, 3  ;;  %s391_s12 = scalar_lea.sflag [#allocation3], %s7126_s20 }
  0xcc   : > { %s394_s23 = scalar_lea.vmem [#allocation2], %s7129_s3 }
  0xcd   : > { %6735 = dma.done.wait (%p8720_p11), %s391_s12, 128  }
  0xce   : > { %6737 = vsyncadd (%p8720_p11), %s391_s12, 4294967168  ;;  %s399_s18 = sand.u32 1, %s6871_s11   ;;  %s4013_s7 = sshll.u32 %s7126_s20, 7 }
  0xcf   : > { %s400_s30 = scalar_lea.sflag [#allocation6], %s399_s18  ;;  %s7139_s4 = scalar_lea.vmem [#allocation5], %s4013_s7 }
  0xd0   : > { %6739 = dma.done.wait (%p8720_p11), %s400_s30, 4096  }
  0xd1   : > { %6741 = vsyncadd (%p8720_p11), %s400_s30, 4294963200  ;;  %s7145_s8 = scalar_lea.vmem [#allocation7], %s4013_s7  ;;  %p8721_p13 = scmp.eq.s32.totalorder %s6871_s11, 0 }
  0xd3   : > { %6743 = dma.done.wait (%p8721_p13), [#allocation9], 4096   ;;  %p8722_p5 = pmov %p8721_p13 }
  0xd5   : > { %6745 = vsyncadd (%p8722_p5), [#allocation9], 4294963200  ;;  %p8723_p12 = pmov %p8722_p5 }
  0xd6   : > { %p8724_p1 = pmov %p8722_p5 }
  0xd7   : > { %6747 = dma.done.wait (%p8723_p12), [#allocation12], 2048  }
  0xd8   : > { %6749 = vsyncadd (%p8724_p1), [#allocation12], 4294965248  ;;  %v8653_v0 = vmov 0.0|0.0   ;;  %vm6791_vm0 = vmmov 0   ;;  %v8644_v1 = vmov 0.0   ;;  %v505_v2 = vld [vmem:[#allocation8] sm:$0xff] }
  0xd9   : > { %5589 = vmatprep.subr.bf16.mxu0 %v8653_v0  ;;  %4571 = vmatprep.mubr.msk.f32.mxu0 %vm6791_vm0, %v8644_v1  ;;  %v506_v3 = vld [vmem:[#allocation8 + $0x8] sm:$0xff]  ;;  %v507_v4 = vld [vmem:[#allocation8 + $0x10] sm:$0xff]  ;;  %v522_v5 = vand.u32 4294901760, %v505_v2  ;;  %v508_v7 = vld [vmem:[#allocation8 + $0x18] sm:$0xff]  ;;  %s8727_s13 = sld [smem:[#allocation52_spill]]  ;;  %s471_s16 = scalar_lea.vmem [#allocation14], %s7129_s3 }
  0xda   : > { %5805 = vmatprep.subr.bf16.mxu1 %v8653_v0  ;;  %4886 = vmatprep.mubr.msk.f32.mxu1 %vm6791_vm0, %v8644_v1  ;;  %v525_v6 = vand.u32 4294901760, %v506_v3  ;;  %v528_v8 = vand.u32 4294901760, %v507_v4  ;;  %v531_v9 = vand.u32 4294901760, %v508_v7  ;;  %v509_v10 = vld [vmem:[#allocation8 + $0x20] sm:$0xff]  ;;  %v510_v11 = vld [vmem:[#allocation8 + $0x28] sm:$0xff]  ;;  %v511_v16 = vld [vmem:[#allocation8 + $0x30] sm:$0xff] }
  0xdb   : > { %v534_v14 = vand.u32 4294901760, %v509_v10  ;;  %v537_v15 = vand.u32 4294901760, %v510_v11  ;;  %v512_v17 = vld [vmem:[#allocation8 + $0x38] sm:$0xff]  ;;  %v540_v19 = vand.u32 4294901760, %v511_v16  ;;  %v513_v21 = vld [vmem:[#allocation8 + $0x40] sm:$0xff]  ;;  %v514_v22 = vld [vmem:[#allocation8 + $0x48] sm:$0xff]  ;;  %v7173_v24 = vsub.f32 %v505_v2, %v522_v5 }
  0xdc   : > { %v7161_v12 = vpack.c.bf16 %v525_v6, %v522_v5  ;;  %v7164_v13 = vpack.c.bf16 %v531_v9, %v528_v8  ;;  %v543_v20 = vand.u32 4294901760, %v512_v17  ;;  %v472_v23 = vld [vmem:[%s394_s23] sm:$0xff]  ;;  %v7175_v25 = vsub.f32 %v506_v3, %v525_v6  ;;  %v517_v32 = vld [vmem:[#allocation8 + $0x60] sm:$0xff]  ;;  %v518_v35 = vld [vmem:[#allocation8 + $0x68] sm:$0xff]  ;;  %s8802_s17 = sld [smem:[#allocation24_spill]]  ;;  %s8803_s29 = sld [smem:[#allocation26_spill]] }
  0xdd   : > { %v7168_v18 = vpack.c.bf16 %v537_v15, %v534_v14  ;;  %v546_v27 = vand.u32 4294901760, %v513_v21  ;;  %v549_v28 = vand.u32 4294901760, %v514_v22  ;;  %v515_v29 = vld [vmem:[#allocation8 + $0x50] sm:$0xff]  ;;  %v516_v30 = vld [vmem:[#allocation8 + $0x58] sm:$0xff]  ;;  %v7181_v31 = vand.u32 4294901760, %v472_v23  ;;  %s8804_s22 = sld [smem:[#allocation55_spill]] }
  0xde   : > { %5591 = vmatpush3.bf16.msra.mxu0 %v7161_v12  ;;  %v7178_v26 = vpack.c.bf16 %v543_v20, %v540_v19  ;;  %v7183_v33 = vsub.f32 %v507_v4, %v528_v8  ;;  %v552_v34 = vand.u32 4294901760, %v515_v29  ;;  %v519_v36 = vld [vmem:[#allocation8 + $0x70] sm:$0xff]  ;;  %v520_v37 = vld [vmem:[#allocation8 + $0x78] sm:$0xff]  ;;  %v555_v39 = vand.u32 4294901760, %v516_v30  ;;  %s3811_s24 = sshll.u32 %s471_s16, 4  ;;  %s3783_s14 = scalar_lea.sflag [#allocation15], %s7126_s20  ;;  %s3812_s24 = int_to_ptr.vmem [resolvable:$true] %s3811_s24 }
  0xdf   : > { %5592 = vmatprep.subr.bf16.mxu0 %v8653_v0  ;;  %v7186_v38 = vpack.c.bf16 %v549_v28, %v546_v27  ;;  %v615_v40 = vand.u32 4294901760, %v7173_v24  ;;  %v622_v41 = vand.u32 4294901760, %v7175_v25  ;;  %v7190_v42 = vsub.f32 %v508_v7, %v531_v9  ;;  %s6654_s27 = scalar_lea.vmem %s3812_s24, 128  ;;  %s6793_s26 = smov [#allocation14]  }
  0xe0   : > { %v7192_v43 = vsub.f32 %v509_v10, %v534_v14  ;;  %v7194_v44 = vsub.f32 %v510_v11, %v537_v15  ;;  %v7198_v45 = vsub.f32 %v472_v23, %v7181_v31  ;;  %v558_v46 = vand.u32 4294901760, %v517_v32  ;;  %p6655_p4 = scmp.ne.s32.totalorder %s3812_s24, %s6654_s27  ;;  %s6658_s10 = sshll.u32 %s6793_s26, 4  ;;  %s6659_s10 = int_to_ptr.vmem [resolvable:$false] %s6658_s10 }
  0xe1   : > { %v561_v47 = vand.u32 4294901760, %v518_v35  ;;  %v564_v48 = vand.u32 4294901760, %v519_v36  ;;  %v567_v49 = vand.u32 4294901760, %v520_v37  ;;  %v7200_v50 = vsub.f32 %v511_v16, %v540_v19  ;;  %s6660_s12 = scalar_lea.vmem %s6659_s10, 256  ;;  %p6661_p0 = scmp.lt.s32.totalorder %s3812_s24, %s6659_s10 }
  0xe2   : > { %5594 = vmatpush3.bf16.msra.mxu0 %v7164_v13  ;;  %8725 = vst [vmem:[#allocation30_spill] sm:$0xff] %v7198_v45  ;;  %v7202_v51 = vsub.f32 %v512_v17, %v543_v20  ;;  %v7204_v52 = vsub.f32 %v513_v21, %v546_v27  ;;  %v629_v53 = vand.u32 4294901760, %v7183_v33  ;;  %v7208_v54 = vsub.f32 %v514_v22, %v549_v28  ;;  %s4023_s19 = sshll.u32 %s8802_s17, 7  ;;  %p8805_p9 = scmp.ne.s32.totalorder %s8803_s29, 0 }
  0xe3   : > { %5595 = vmatprep.subr.bf16.mxu0 %v8653_v0  ;;  %v7210_v55 = vpack.c.bf16 %v555_v39, %v552_v34  ;;  %v616_v56 = vsub.f32 %v7173_v24, %v615_v40  ;;  %v623_v57 = vsub.f32 %v7175_v25, %v622_v41  ;;  %v7215_v58 = vsub.f32 %v515_v29, %v552_v34  ;;  %s8513_s1 = scalar_lea.hbm %s8804_s22, %s4023_s19  ;;  %p6662_p6 = scmp.lt.s32.totalorder %s6660_s12, %s6654_s27 }
  0xe4   : > { %v7217_v59 = vsub.f32 %v516_v30, %v555_v39  ;;  %v7219_v60 = vsub.f32 %v517_v32, %v558_v46  ;;  %v7222_v61 = vand.u32 4294901760, %v7198_v45  ;;  %v7224_v62 = vpack.c.bf16 %v561_v47, %v558_v46  ;;  %p6656_p7 = pnand %p6655_p4, %p8805_p9 }
  0xe5   : > { %v7226_v63 = vsub.f32 %v518_v35, %v561_v47  ;;  %v7228_v2 = vpack.c.bf16 %v567_v49, %v564_v48  ;;  %v7230_v3 = vsub.f32 %v519_v36, %v564_v48  ;;  %v7232_v4 = vsub.f32 %v520_v37, %v567_v49  ;;  %p6663_p3 = por %p6662_p6, %p6661_p0 }
  0xe6   : > { %5597 = vmatpush3.bf16.msra.mxu0 %v7168_v18  ;;  %8726 = vst [vmem:[#allocation31_spill] sm:$0xff] %v7222_v61  ;;  %v630_v5 = vsub.f32 %v7183_v33, %v629_v53  ;;  %v636_v6 = vand.u32 4294901760, %v7190_v42  ;;  %v643_v7 = vand.u32 4294901760, %v7192_v43  ;;  %v617_v8 = vand.u32 4294901760, %v616_v56  ;;  %p6657_p2 = pneg %p6656_p7 }
  0xe7   : > { %5598 = vmatprep.subr.bf16.mxu0 %v8653_v0  ;;  %v624_v9 = vand.u32 4294901760, %v623_v57  ;;  %v650_v10 = vand.u32 4294901760, %v7194_v44  ;;  %v657_v11 = vand.u32 4294901760, %v7200_v50  ;;  %v605_v14 = vsub.f32 %v7198_v45, %v7222_v61 }
  0xe8   : > { %v664_v15 = vand.u32 4294901760, %v7202_v51  ;;  %v671_v16 = vand.u32 4294901760, %v7204_v52  ;;  %v678_v17 = vand.u32 4294901760, %v7208_v54  ;;  %v685_v19 = vand.u32 4294901760, %v7215_v58  ;;  %p6664_p8 = pnand %p6663_p3, %p6657_p2 }
  0xe9   : > { %v692_v20 = vand.u32 4294901760, %v7217_v59  ;;  %v699_v21 = vand.u32 4294901760, %v7219_v60  ;;  %v706_v22 = vand.u32 4294901760, %v7226_v63  ;;  %v713_v23 = vand.u32 4294901760, %v7230_v3 }
  0xea   : > { %5600 = vmatpush3.bf16.msra.mxu0 %v7178_v26  ;;  %v720_v27 = vand.u32 4294901760, %v7232_v4  ;;  %v7252_v28 = vpack.c.bf16 %v622_v41, %v615_v40  ;;  %v7254_v29 = vpack.c.bf16 %v636_v6, %v629_v53  ;;  %v637_v30 = vsub.f32 %v7190_v42, %v636_v6 }
  0xeb   : > { %5601 = vmatprep.subr.bf16.mxu0 %v8653_v0  ;;  %v7258_v32 = vpack.c.bf16 %v650_v10, %v643_v7  ;;  %v7260_v34 = vpack.c.bf16 %v664_v15, %v657_v11  ;;  %v7262_v35 = vpack.c.bf16 %v678_v17, %v671_v16  ;;  %v7265_v36 = vpack.c.bf16 %v692_v20, %v685_v19 }
  0xec   : > { %v7267_v37 = vpack.c.bf16 %v706_v22, %v699_v21  ;;  %v7269_v39 = vpack.c.bf16 %v720_v27, %v713_v23  ;;  %v7271_v40 = vand.u32 4294901760, %v605_v14  ;;  %v631_v41 = vand.u32 4294901760, %v630_v5 }
  0xed   : > { %v5614_v46 = vpack.c.bf16 %v624_v9, %v617_v8  ;;  %v638_v47 = vand.u32 4294901760, %v637_v30  ;;  %v644_v48 = vsub.f32 %v7192_v43, %v643_v7  ;;  %v651_v49 = vsub.f32 %v7194_v44, %v650_v10 }
  0xee   : > { %5603 = vmatpush3.bf16.msra.mxu0 %v7186_v38  ;;  %v658_v53 = vsub.f32 %v7200_v50, %v657_v11  ;;  %v665_v5 = vsub.f32 %v7202_v51, %v664_v15  ;;  %v672_v7 = vsub.f32 %v7204_v52, %v671_v16  ;;  %v679_v14 = vsub.f32 %v7208_v54, %v678_v17 }
  0xef   : > { %5604 = vmatprep.subr.bf16.mxu0 %v8653_v0  ;;  %v5617_v56 = vpack.c.bf16 %v638_v47, %v631_v41  ;;  %v645_v57 = vand.u32 4294901760, %v644_v48  ;;  %v652_v6 = vand.u32 4294901760, %v651_v49  ;;  %v686_v15 = vsub.f32 %v7215_v58, %v685_v19 }
  0xf0   : > { %v659_v9 = vand.u32 4294901760, %v658_v53  ;;  %v666_v10 = vand.u32 4294901760, %v665_v5  ;;  %v673_v11 = vand.u32 4294901760, %v672_v7  ;;  %v680_v41 = vand.u32 4294901760, %v679_v14  ;;  %v490_v7 = vld [vmem:[%s7145_s8 + $0x8] sm:$0xff]  ;;  %v491_v14 = vld [vmem:[%s7145_s8 + $0x10] sm:$0xff] }
  0xf1   : > { %v5620_v8 = vpack.c.bf16 %v652_v6, %v645_v57  ;;  %v700_v16 = vsub.f32 %v7219_v60, %v699_v21  ;;  %v687_v48 = vand.u32 4294901760, %v686_v15  ;;  %v707_v17 = vsub.f32 %v7226_v63, %v706_v22 }
  0xf2   : > { %5606 = vmatpush3.bf16.msra.mxu0 %v7210_v55  ;;  %v5623_v30 = vpack.c.bf16 %v666_v10, %v659_v9  ;;  %v5626_v47 = vpack.c.bf16 %v680_v41, %v673_v11  ;;  %v714_v19 = vsub.f32 %v7230_v3, %v713_v23  ;;  %v5638_v23 = vpack.c.bf16 %v7175_v25, %v7173_v24  ;;  %v492_v11 = vld [vmem:[%s7145_s8 + $0x18] sm:$0xff] }
  0xf3   : > { %5607 = vmatprep.subr.bf16.mxu0 %v8653_v0  ;;  %v701_v53 = vand.u32 4294901760, %v700_v16  ;;  %v708_v57 = vand.u32 4294901760, %v707_v17  ;;  %v1173_v10 = vand.u32 4294901760, %v490_v7  ;;  %v1176_v24 = vand.u32 4294901760, %v491_v14 }
  0xf4   : > { %v715_v6 = vand.u32 4294901760, %v714_v19  ;;  %v1179_v25 = vand.u32 4294901760, %v492_v11  ;;  %v496_v19 = vld [vmem:[%s7145_s8 + $0x38] sm:$0xff] }
  0xf5   : > { %v5632_v21 = vpack.c.bf16 %v708_v57, %v701_v53  ;;  %v7314_v15 = vsub.f32 %v490_v7, %v1173_v10  ;;  %v495_v57 = vld [vmem:[%s7145_s8 + $0x30] sm:$0xff] }
  0xf6   : > { %5609 = vmatpush3.bf16.msra.mxu0 %v7224_v62  ;;  %v7323_v16 = vpack.c.bf16 %v1179_v25, %v1176_v24 }
  0xf7   : > { %5610 = vmatprep.subr.bf16.mxu0 %v8653_v0 }
  0xfa   : > { %5612 = vmatpush3.bf16.msra.mxu0 %v7228_v2 }
  0xfb   : > { %5613 = vmatprep.subr.bf16.mxu0 %v8653_v0 }
  0xfd   : > { %4572 = vmatmul.mubr.f32.vlgmr.msra.gmra.mrb[0].mxu0 %v7271_v40 }
  0xfe   : > { %5615 = vmatpush3.bf16.msra.mxu0 %v5614_v46  ;;  %4606 = vmatprep.mubr.msk.f32.mxu0 %vm6791_vm0, %v8644_v1  ;;  %v693_v46 = vsub.f32 %v7217_v59, %v692_v20  ;;  %v721_v20 = vsub.f32 %v7232_v4, %v720_v27  ;;  %v489_v27 = vld [vmem:[%s7145_s8] sm:$0xff] }
  0xff   : > { %5616 = vmatprep.subr.bf16.mxu0 %v8653_v0  ;;  %v1170_v9 = vand.u32 4294901760, %v489_v27 }
 0x100   : > { %v694_v49 = vand.u32 4294901760, %v693_v46  ;;  %v722_v5 = vand.u32 4294901760, %v721_v20  ;;  %v5644_v46 = vpack.c.bf16 %v7194_v44, %v7192_v43  ;;  %v5647_v43 = vpack.c.bf16 %v7202_v51, %v7200_v50 }
 0x101   : > { %v7312_v41 = vsub.f32 %v489_v27, %v1170_v9  ;;  %v1188_v20 = vand.u32 4294901760, %v495_v57  ;;  %v5650_v50 = vpack.c.bf16 %v7208_v54, %v7204_v52  ;;  %v5653_v52 = vpack.c.bf16 %v7217_v59, %v7215_v58 }
 0x102   : > { %5618 = vmatpush3.bf16.msra.mxu0 %v5617_v56  ;;  %v5629_v56 = vpack.c.bf16 %v694_v49, %v687_v48  ;;  %v5635_v22 = vpack.c.bf16 %v722_v5, %v715_v6  ;;  %v494_v48 = vld [vmem:[%s7145_s8 + $0x28] sm:$0xff]  ;;  %v5656_v58 = vpack.c.bf16 %v7226_v63, %v7219_v60  ;;  %v5659_v60 = vpack.c.bf16 %v7232_v4, %v7230_v3 }
 0x103   : > { %5619 = vmatprep.subr.bf16.mxu0 %v8653_v0  ;;  %v1185_v17 = vand.u32 4294901760, %v494_v48  ;;  %v7342_v6 = vsub.f32 %v495_v57, %v1188_v20  ;;  %v1270_v3 = vand.u32 4294901760, %v7314_v15 }
 0x106   : > { %5621 = vmatpush3.bf16.msra.mxu0 %v5620_v8  ;;  %v5641_v8 = vpack.c.bf16 %v7190_v42, %v7183_v33  ;;  %v7316_v33 = vsub.f32 %v491_v14, %v1176_v24  ;;  %v7318_v42 = vsub.f32 %v492_v11, %v1179_v25  ;;  %v500_v14 = vld [vmem:[%s7145_s8 + $0x58] sm:$0xff] }
 0x107   : > { %5622 = vmatprep.subr.bf16.mxu0 %v8653_v0  ;;  %v1203_v24 = vand.u32 4294901760, %v500_v14 }
 0x10a   : > { %5624 = vmatpush3.bf16.msra.mxu0 %v5623_v30  ;;  %v7310_v30 = vpack.c.bf16 %v1173_v10, %v1170_v9  ;;  %v499_v10 = vld [vmem:[%s7145_s8 + $0x50] sm:$0xff] }
 0x10b   : > { %5625 = vmatprep.subr.bf16.mxu0 %v8653_v0  ;;  %v1200_v11 = vand.u32 4294901760, %v499_v10 }
 0x10c   : > { %5807 = vmatpush3.bf16.msra.mxu1 %v7310_v30 }
 0x10d   : > { %5808 = vmatprep.subr.bf16.mxu1 %v8653_v0  ;;  %v7368_v25 = vsub.f32 %v499_v10, %v1200_v11  ;;  %v7375_v59 = vpack.c.bf16 %v1203_v24, %v1200_v11 }
 0x10e   : > { %5627 = vmatpush3.bf16.msra.mxu0 %v5626_v47  ;;  %v493_v47 = vld [vmem:[%s7145_s8 + $0x20] sm:$0xff] }
 0x10f   : > { %5628 = vmatprep.subr.bf16.mxu0 %v8653_v0  ;;  %v1182_v49 = vand.u32 4294901760, %v493_v47 }
 0x110   : > { %5810 = vmatpush3.bf16.msra.mxu1 %v7323_v16 }
 0x111   : > { %v7329_v53 = vsub.f32 %v493_v47, %v1182_v49  ;;  %v7336_v44 = vpack.c.bf16 %v1185_v17, %v1182_v49  ;;  %5811 = vmatprep.subr.bf16.mxu1 %v8653_v0  ;;  %v501_v47 = vld [vmem:[%s7145_s8 + $0x60] sm:$0xff] }
 0x112   : > { %5630 = vmatpush3.bf16.msra.mxu0 %v5629_v56  ;;  %v7331_v56 = vsub.f32 %v494_v48, %v1185_v17  ;;  %v502_v48 = vld [vmem:[%s7145_s8 + $0x68] sm:$0xff]  ;;  %v1206_v49 = vand.u32 4294901760, %v501_v47 }
 0x113   : > { %5631 = vmatprep.subr.bf16.mxu0 %v8653_v0  ;;  %v1209_v17 = vand.u32 4294901760, %v502_v48 }
 0x114   : > { %5813 = vmatpush3.bf16.msra.mxu1 %v7336_v44 }
 0x115   : > { %5814 = vmatprep.subr.bf16.mxu1 %v8653_v0  ;;  %v7383_v57 = vsub.f32 %v502_v48, %v1209_v17  ;;  %v7388_v63 = vpack.c.bf16 %v1209_v17, %v1206_v49 }
 0x116   : > { %5633 = vmatpush3.bf16.msra.mxu0 %v5632_v21  ;;  %v1191_v21 = vand.u32 4294901760, %v496_v19 }
 0x117   : > { %5634 = vmatprep.subr.bf16.mxu0 %v8653_v0 }
 0x118   : > { %v7344_v5 = vsub.f32 %v496_v19, %v1191_v21  ;;  %v7349_v51 = vpack.c.bf16 %v1191_v21, %v1188_v20 }
 0x11a   : > { %5636 = vmatpush3.bf16.msra.mxu0 %v5635_v22  ;;  %v497_v22 = vld [vmem:[%s7145_s8 + $0x40] sm:$0xff]  ;;  %5816 = vmatpush3.bf16.msra.mxu1 %v7349_v51 }
 0x11b   : > { %5637 = vmatprep.subr.bf16.mxu0 %v8653_v0  ;;  %v1194_v27 = vand.u32 4294901760, %v497_v22  ;;  %5817 = vmatprep.subr.bf16.mxu1 %v8653_v0 }
 0x11d   : > { %4607 = vmatmul.mubr.f32.vlgmr.msra.gmra.mrb[0].mxu0 %v7181_v31 }
 0x11e   : > { %5639 = vmatpush3.bf16.msra.mxu0 %v5638_v23  ;;  %4641 = vmatprep.mubr.msk.f32.mxu0 %vm6791_vm0, %v8644_v1  ;;  %v498_v23 = vld [vmem:[%s7145_s8 + $0x48] sm:$0xff] }
 0x11f   : > { %5640 = vmatprep.subr.bf16.mxu0 %v8653_v0  ;;  %v1197_v7 = vand.u32 4294901760, %v498_v23 }
 0x121   : > { %v7357_v9 = vsub.f32 %v498_v23, %v1197_v7  ;;  %v7362_v54 = vpack.c.bf16 %v1197_v7, %v1194_v27  ;;  %v1298_v23 = vand.u32 4294901760, %v7331_v56 }
 0x122   : > { %5642 = vmatpush3.bf16.msra.mxu0 %v5641_v8  ;;  %v7355_v8 = vsub.f32 %v497_v22, %v1194_v27  ;;  %v1291_v22 = vand.u32 4294901760, %v7329_v53 }
 0x123   : > { %5643 = vmatprep.subr.bf16.mxu0 %v8653_v0  ;;  %5819 = vmatpush3.bf16.msra.mxu1 %v7362_v54  ;;  %v1299_v10 = vsub.f32 %v7331_v56, %v1298_v23 }
 0x124   : > { %5820 = vmatprep.subr.bf16.mxu1 %v8653_v0  ;;  %v7499_v7 = vpack.c.bf16 %v1298_v23, %v1291_v22 }
 0x125   : > { %v1300_v11 = vand.u32 4294901760, %v1299_v10 }
 0x126   : > { %5645 = vmatpush3.bf16.msra.mxu0 %v5644_v46  ;;  %v7370_v46 = vsub.f32 %v500_v14, %v1203_v24  ;;  %v1305_v24 = vand.u32 4294901760, %v7342_v6 }
 0x127   : > { %5646 = vmatprep.subr.bf16.mxu0 %v8653_v0  ;;  %5822 = vmatpush3.bf16.msra.mxu1 %v7375_v59 }
 0x128   : > { %5823 = vmatprep.subr.bf16.mxu1 %v8653_v0 }
 0x12a   : > { %5648 = vmatpush3.bf16.msra.mxu0 %v5647_v43  ;;  %v7381_v43 = vsub.f32 %v501_v47, %v1206_v49  ;;  %v1306_v49 = vsub.f32 %v7342_v6, %v1305_v24 }
 0x12b   : > { %5649 = vmatprep.subr.bf16.mxu0 %v8653_v0  ;;  %5825 = vmatpush3.bf16.msra.mxu1 %v7388_v63 }
 0x12c   : > { %5826 = vmatprep.subr.bf16.mxu1 %v8653_v0  ;;  %v1347_v23 = vand.u32 4294901760, %v7381_v43 }
 0x12e   : > { %5651 = vmatpush3.bf16.msra.mxu0 %v5650_v50 }
 0x12f   : > { %5652 = vmatprep.subr.bf16.mxu0 %v8653_v0 }
 0x132   : > { %5654 = vmatpush3.bf16.msra.mxu0 %v5653_v52  ;;  %v1292_v52 = vsub.f32 %v7329_v53, %v1291_v22 }
 0x133   : > { %5655 = vmatprep.subr.bf16.mxu0 %v8653_v0 }
 0x134   : > { %v1293_v14 = vand.u32 4294901760, %v1292_v52  ;;  %v1354_v52 = vand.u32 4294901760, %v7383_v57 }
 0x136   : > { %5657 = vmatpush3.bf16.msra.mxu0 %v5656_v58  ;;  %v1312_v58 = vand.u32 4294901760, %v7344_v5  ;;  %v7505_v47 = vpack.c.bf16 %v1300_v11, %v1293_v14  ;;  %v5848_v14 = vpack.c.bf16 %v1354_v52, %v1347_v23  ;;  %v1348_v11 = vsub.f32 %v7381_v43, %v1347_v23 }
 0x137   : > { %5658 = vmatprep.subr.bf16.mxu0 %v8653_v0  ;;  %v5800_v23 = vpack.c.bf16 %v7383_v57, %v7381_v43  ;;  %v476_v43 = vld [vmem:[%s7139_s4 + $0x18] sm:$0xff] }
 0x138   : > { %v7507_v48 = vpack.c.bf16 %v1312_v58, %v1305_v24  ;;  %v1313_v17 = vsub.f32 %v7344_v5, %v1312_v58  ;;  %v1355_v24 = vsub.f32 %v7383_v57, %v1354_v52  ;;  %v1349_v58 = vand.u32 4294901760, %v1348_v11 }
 0x13a   : > { %5660 = vmatpush3.bf16.msra.mxu0 %v5659_v60  ;;  %v1307_v60 = vand.u32 4294901760, %v1306_v49  ;;  %v1356_v49 = vand.u32 4294901760, %v1355_v24 }
 0x13b   : > { %5661 = vmatprep.subr.bf16.mxu0 %v8653_v0 }
 0x13d   : > { %4642 = vmatmul.mubr.f32.vlgmr.msra.gmra.mrb[0].mxu0 %v7198_v45 }
 0x13e   : > { %5663 = vmatpush3.bf16.msra.mxu0 %v7161_v12  ;;  %4676 = vmatprep.mubr.msk.f32.mxu0 %vm6791_vm0, %v8644_v1 }
 0x13f   : > { %5664 = vmatprep.subr.bf16.mxu0 %v8653_v0 }
 0x142   : > { %5666 = vmatpush3.bf16.msra.mxu0 %v7164_v13 }
 0x143   : > { %5667 = vmatprep.subr.bf16.mxu0 %v8653_v0 }
 0x146   : > { %5669 = vmatpush3.bf16.msra.mxu0 %v7168_v18 }
 0x147   : > { %5670 = vmatprep.subr.bf16.mxu0 %v8653_v0 }
 0x14a   : > { %5672 = vmatpush3.bf16.msra.mxu0 %v7178_v26 }
 0x14b   : > { %5673 = vmatprep.subr.bf16.mxu0 %v8653_v0 }
 0x14e   : > { %5675 = vmatpush3.bf16.msra.mxu0 %v7186_v38 }
 0x14f   : > { %5676 = vmatprep.subr.bf16.mxu0 %v8653_v0 }
 0x152   : > { %5678 = vmatpush3.bf16.msra.mxu0 %v7210_v55 }
 0x153   : > { %5679 = vmatprep.subr.bf16.mxu0 %v8653_v0 }
 0x156   : > { %5681 = vmatpush3.bf16.msra.mxu0 %v7224_v62 }
 0x157   : > { %5682 = vmatprep.subr.bf16.mxu0 %v8653_v0 }
 0x15a   : > { %5684 = vmatpush3.bf16.msra.mxu0 %v7228_v2 }
 0x15b   : > { %5685 = vmatprep.subr.bf16.mxu0 %v8653_v0 }
 0x15d   : > { %4677 = vmatmul.mubr.f32.vlgmr.msra.gmra.mrb[0].mxu0 %v7222_v61 }
 0x15e   : > { %5687 = vmatpush3.bf16.msra.mxu0 %v7252_v28  ;;  %4711 = vmatprep.mubr.msk.f32.mxu0 %vm6791_vm0, %v8644_v1 }
 0x15f   : > { %5688 = vmatprep.subr.bf16.mxu0 %v8653_v0 }
 0x162   : > { %5690 = vmatpush3.bf16.msra.mxu0 %v7254_v29  ;;  %v1271_v29 = vsub.f32 %v7314_v15, %v1270_v3 }
 0x163   : > { %5691 = vmatprep.subr.bf16.mxu0 %v8653_v0 }
 0x166   : > { %5693 = vmatpush3.bf16.msra.mxu0 %v7258_v32 }
 0x167   : > { %5694 = vmatprep.subr.bf16.mxu0 %v8653_v0 }
 0x16a   : > { %5696 = vmatpush3.bf16.msra.mxu0 %v7260_v34  ;;  %v1272_v34 = vand.u32 4294901760, %v1271_v29 }
 0x16b   : > { %5697 = vmatprep.subr.bf16.mxu0 %v8653_v0 }
 0x16e   : > { %5699 = vmatpush3.bf16.msra.mxu0 %v7262_v35  ;;  %v1277_v35 = vand.u32 4294901760, %v7316_v33 }
 0x16f   : > { %5700 = vmatprep.subr.bf16.mxu0 %v8653_v0 }
 0x170   : > { %v1278_v19 = vsub.f32 %v7316_v33, %v1277_v35 }
 0x172   : > { %5702 = vmatpush3.bf16.msra.mxu0 %v7265_v36  ;;  %v1284_v36 = vand.u32 4294901760, %v7318_v42  ;;  %v1279_v21 = vand.u32 4294901760, %v1278_v19 }
 0x173   : > { %5703 = vmatprep.subr.bf16.mxu0 %v8653_v0 }
 0x174   : > { %v1285_v20 = vsub.f32 %v7318_v42, %v1284_v36 }
 0x176   : > { %5705 = vmatpush3.bf16.msra.mxu0 %v7267_v37  ;;  %v1286_v50 = vand.u32 4294901760, %v1285_v20 }
 0x177   : > { %5706 = vmatprep.subr.bf16.mxu0 %v8653_v0 }
 0x178   : > { %v7497_v27 = vpack.c.bf16 %v1286_v50, %v1279_v21 }
 0x17a   : > { %5708 = vmatpush3.bf16.msra.mxu0 %v7269_v39  ;;  %v7491_v39 = vpack.c.bf16 %v1284_v36, %v1277_v35  ;;  %v1340_v35 = vand.u32 4294901760, %v7370_v46 }
 0x17b   : > { %5709 = vmatprep.subr.bf16.mxu0 %v8653_v0 }
 0x17c   : > { %v1341_v21 = vsub.f32 %v7370_v46, %v1340_v35 }
 0x17d   : > { %4712 = vmatmul.mubr.f32.vlgmr.msra.gmra.mrb[0].mxu0 %v7181_v31 }
 0x17e   : > { %5711 = vmatpush3.bf16.msra.mxu0 %v7161_v12  ;;  %4746 = vmatprep.mubr.msk.f32.mxu0 %vm6791_vm0, %v8644_v1  ;;  %v503_v12 = vld [vmem:[%s7145_s8 + $0x70] sm:$0xff]  ;;  %v1342_v22 = vand.u32 4294901760, %v1341_v21  ;;  %v5791_v21 = vpack.c.bf16 %v7344_v5, %v7342_v6 }
 0x17f   : > { %5712 = vmatprep.subr.bf16.mxu0 %v8653_v0 }
 0x182   : > { %5714 = vmatpush3.bf16.msra.mxu0 %v7164_v13  ;;  %v504_v13 = vld [vmem:[%s7145_s8 + $0x78] sm:$0xff] }
 0x183   : > { %5715 = vmatprep.subr.bf16.mxu0 %v8653_v0 }
 0x186   : > { %5717 = vmatpush3.bf16.msra.mxu0 %v7168_v18  ;;  %v1212_v18 = vand.u32 4294901760, %v503_v12 }
 0x187   : > { %5718 = vmatprep.subr.bf16.mxu0 %v8653_v0 }
 0x18a   : > { %5720 = vmatpush3.bf16.msra.mxu0 %v7178_v26  ;;  %v1215_v26 = vand.u32 4294901760, %v504_v13 }
 0x18b   : > { %5721 = vmatprep.subr.bf16.mxu0 %v8653_v0 }
 0x18e   : > { %5723 = vmatpush3.bf16.msra.mxu0 %v7186_v38  ;;  %v7471_v38 = vpack.c.bf16 %v1215_v26, %v1212_v18 }
 0x18f   : > { %5724 = vmatprep.subr.bf16.mxu0 %v8653_v0 }
 0x190   : > { %5828 = vmatpush3.bf16.msra.mxu1 %v7471_v38 }
 0x191   : > { %5829 = vmatprep.subr.bf16.mxu1 %v8653_v0 }
 0x192   : > { %5726 = vmatpush3.bf16.msra.mxu0 %v7210_v55  ;;  %v7473_v55 = vsub.f32 %v503_v12, %v1212_v18  ;;  %v1314_v12 = vand.u32 4294901760, %v1313_v17  ;;  %v1326_v18 = vand.u32 4294901760, %v7357_v9 }
 0x193   : > { %5727 = vmatprep.subr.bf16.mxu0 %v8653_v0 }
 0x194   : > { %v1361_v17 = vand.u32 4294901760, %v7473_v55 }
 0x196   : > { %5729 = vmatpush3.bf16.msra.mxu0 %v7224_v62  ;;  %v7475_v62 = vsub.f32 %v504_v13, %v1215_v26  ;;  %v1319_v13 = vand.u32 4294901760, %v7355_v8  ;;  %v7513_v26 = vpack.c.bf16 %v1314_v12, %v1307_v60  ;;  %v5776_v12 = vpack.c.bf16 %v1356_v49, %v1349_v58  ;;  %v479_v58 = vld [vmem:[%s7139_s4 + $0x30] sm:$0xff]  ;;  %v480_v49 = vld [vmem:[%s7139_s4 + $0x38] sm:$0xff] }
 0x197   : > { %5730 = vmatprep.subr.bf16.mxu0 %v8653_v0 }
 0x198   : > { %v1368_v60 = vand.u32 4294901760, %v7475_v62 }
 0x19a   : > { %5732 = vmatpush3.bf16.msra.mxu0 %v7228_v2  ;;  %v1263_v2 = vand.u32 4294901760, %v7312_v41 }
 0x19b   : > { %5733 = vmatprep.subr.bf16.mxu0 %v8653_v0 }
 0x19c   : > { %v7483_v4 = vpack.c.bf16 %v1270_v3, %v1263_v2  ;;  %v1264_v28 = vsub.f32 %v7312_v41, %v1263_v2  ;;  %v7515_v2 = vpack.c.bf16 %v1326_v18, %v1319_v13  ;;  %v1320_v3 = vsub.f32 %v7355_v8, %v1319_v13 }
 0x19d   : > { %4747 = vmatmul.mubr.f32.vlgmr.msra.gmra.mrb[0].mxu0 %v7181_v31  ;;  %v5851_v13 = vpack.c.bf16 %v1368_v60, %v1361_v17 }
 0x19e   : > { %5735 = vmatpush3.bf16.msra.mxu0 %v7310_v30  ;;  %4781 = vmatprep.mubr.msk.f32.mxu0 %vm6791_vm0, %v8644_v1  ;;  %v1265_v32 = vand.u32 4294901760, %v1264_v28  ;;  %v1327_v28 = vsub.f32 %v7357_v9, %v1326_v18  ;;  %v1321_v29 = vand.u32 4294901760, %v1320_v3  ;;  %v1362_v18 = vsub.f32 %v7473_v55, %v1361_v17 }
 0x19f   : > { %5736 = vmatprep.subr.bf16.mxu0 %v8653_v0  ;;  %v1369_v3 = vsub.f32 %v7475_v62, %v1368_v60  ;;  %v1838_v17 = vand.u32 4294901760, %v479_v58  ;;  %v1841_v60 = vand.u32 4294901760, %v480_v49 }
 0x1a0   : > { %v7489_v37 = vpack.c.bf16 %v1272_v34, %v1265_v32  ;;  %v1328_v32 = vand.u32 4294901760, %v1327_v28  ;;  %v1333_v34 = vand.u32 4294901760, %v7368_v25  ;;  %v1363_v28 = vand.u32 4294901760, %v1362_v18  ;;  %v482_v18 = vld [vmem:[%s7139_s4 + $0x48] sm:$0xff] }
 0x1a2   : > { %5738 = vmatpush3.bf16.msra.mxu0 %v7323_v16  ;;  %v5770_v36 = vpack.c.bf16 %v1328_v32, %v1321_v29  ;;  %v5845_v19 = vpack.c.bf16 %v1340_v35, %v1333_v34  ;;  %v1334_v20 = vsub.f32 %v7368_v25, %v1333_v34  ;;  %v1370_v29 = vand.u32 4294901760, %v1369_v3 }
 0x1a3   : > { %5739 = vmatprep.subr.bf16.mxu0 %v8653_v0  ;;  %v5782_v34 = vpack.c.bf16 %v7314_v15, %v7312_v41  ;;  %v5785_v35 = vpack.c.bf16 %v7318_v42, %v7316_v33  ;;  %v5803_v41 = vpack.c.bf16 %v7475_v62, %v7473_v55  ;;  %v1829_v55 = vand.u32 4294901760, %v476_v43 }
 0x1a4   : > { %v1335_v50 = vand.u32 4294901760, %v1334_v20  ;;  %v5779_v32 = vpack.c.bf16 %v1370_v29, %v1363_v28  ;;  %v5788_v20 = vpack.c.bf16 %v7331_v56, %v7329_v53  ;;  %v1847_v28 = vand.u32 4294901760, %v482_v18 }
 0x1a6   : > { %5741 = vmatpush3.bf16.msra.mxu0 %v7336_v44  ;;  %v5773_v10 = vpack.c.bf16 %v1342_v22, %v1335_v50  ;;  %v5794_v50 = vpack.c.bf16 %v7357_v9, %v7355_v8  ;;  %v5797_v22 = vpack.c.bf16 %v7370_v46, %v7368_v25  ;;  %v473_v9 = vld [vmem:[%s7139_s4] sm:$0xff]  ;;  %v475_v25 = vld [vmem:[%s7139_s4 + $0x10] sm:$0xff] }
 0x1a7   : > { %5742 = vmatprep.subr.bf16.mxu0 %v8653_v0  ;;  %v1820_v46 = vand.u32 4294901760, %v473_v9  ;;  %v1826_v57 = vand.u32 4294901760, %v475_v25 }
 0x1aa   : > { %5744 = vmatpush3.bf16.msra.mxu0 %v7349_v51 }
 0x1ab   : > { %5745 = vmatprep.subr.bf16.mxu0 %v8653_v0 }
 0x1ae   : > { %5747 = vmatpush3.bf16.msra.mxu0 %v7362_v54 }
 0x1af   : > { %5748 = vmatprep.subr.bf16.mxu0 %v8653_v0 }
 0x1b2   : > { %5750 = vmatpush3.bf16.msra.mxu0 %v7375_v59 }
 0x1b3   : > { %5751 = vmatprep.subr.bf16.mxu0 %v8653_v0 }
 0x1b6   : > { %5753 = vmatpush3.bf16.msra.mxu0 %v7388_v63 }
 0x1b7   : > { %5754 = vmatprep.subr.bf16.mxu0 %v8653_v0 }
 0x1ba   : > { %5756 = vmatpush3.bf16.msra.mxu0 %v7471_v38 }
 0x1bb   : > { %5757 = vmatprep.subr.bf16.mxu0 %v8653_v0 }
 0x270   : > { %v1158_v15 = vpop.f32.mrb[0].mxu0 }
 0x271   : > { %v7547_v33 = vand.u32 4294901760, %v1158_v15  ;;  %v4748_v42 = vpop.f32.mrb[1].mxu0 }
 0x273   : > { %v7550_v53 = vsub.f32 %v1158_v15, %v7547_v33  ;;  %v7690_v15 = vsub.f32 %v479_v58, %v1838_v17 }
 0x275   : > { %v1252_v56 = vand.u32 4294901760, %v7550_v53  ;;  %8731 = vst [vmem:[#allocation35_spill] sm:$0xff] %v7690_v15 }
 0x277   : > { %v1253_v52 = vsub.f32 %v7550_v53, %v1252_v56  ;;  %4887 = vmatmul.mubr.f32.vlgmr.msra.gmra.mrb[0].mxu1 %v1252_v56  ;;  %v487_v56 = vld [vmem:[%s7139_s4 + $0x70] sm:$0xff] }
 0x278   : > { %5831 = vmatpush3.bf16.msra.mxu1 %v7483_v4  ;;  %4921 = vmatprep.mubr.msk.f32.mxu1 %vm6791_vm0, %v8644_v1 }
 0x279   : > { %v1254_v11 = vand.u32 4294901760, %v1253_v52  ;;  %5832 = vmatprep.subr.bf16.mxu1 %v8653_v0  ;;  %v488_v52 = vld [vmem:[%s7139_s4 + $0x78] sm:$0xff] }
 0x27b   : > { %4782 = vmatmul.mubr.f32.vlgmr.msra.gmra.mrb[2].mxu0 %v1254_v11 }
 0x27c   : > { %5759 = vmatpush3.bf16.msra.mxu0 %v7489_v37  ;;  %5834 = vmatpush3.bf16.msra.mxu1 %v7491_v39  ;;  %v7645_v39 = vsub.f32 %v473_v9, %v1820_v46 }
 0x27d   : > { %5760 = vmatprep.subr.bf16.mxu0 %v8653_v0  ;;  %5835 = vmatprep.subr.bf16.mxu1 %v8653_v0 }
 0x27e   : > { %4816 = vmatprep.mubr.msk.f32.mxu0 %vm6791_vm0, %v8644_v1 }
 0x280   : > { %5762 = vmatpush3.bf16.msra.mxu0 %v7497_v27  ;;  %5837 = vmatpush3.bf16.msra.mxu1 %v7499_v7  ;;  %v7649_v7 = vsub.f32 %v475_v25, %v1826_v57 }
 0x281   : > { %5763 = vmatprep.subr.bf16.mxu0 %v8653_v0  ;;  %5838 = vmatprep.subr.bf16.mxu1 %v8653_v0 }
 0x284   : > { %5765 = vmatpush3.bf16.msra.mxu0 %v7505_v47  ;;  %5840 = vmatpush3.bf16.msra.mxu1 %v7507_v48  ;;  %v7651_v47 = vsub.f32 %v476_v43, %v1829_v55 }
 0x285   : > { %5766 = vmatprep.subr.bf16.mxu0 %v8653_v0  ;;  %5841 = vmatprep.subr.bf16.mxu1 %v8653_v0 }
 0x286   : > { %8728 = vst [vmem:[#allocation32_spill] sm:$0xff] %v7651_v47 }
 0x288   : > { %5768 = vmatpush3.bf16.msra.mxu0 %v7513_v26  ;;  %5843 = vmatpush3.bf16.msra.mxu1 %v7515_v2  ;;  %v7656_v26 = vpack.c.bf16 %v1829_v55, %v1826_v57  ;;  %v8639_v55 = vand.u32 4294901760, %v7651_v47 }
 0x289   : > { %5769 = vmatprep.subr.bf16.mxu0 %v8653_v0  ;;  %5844 = vmatprep.subr.bf16.mxu1 %v8653_v0 }
 0x28c   : > { %5771 = vmatpush3.bf16.msra.mxu0 %v5770_v36  ;;  %5846 = vmatpush3.bf16.msra.mxu1 %v5845_v19 }
 0x28d   : > { %5772 = vmatprep.subr.bf16.mxu0 %v8653_v0  ;;  %5847 = vmatprep.subr.bf16.mxu1 %v8653_v0 }
 0x290   : > { %5774 = vmatpush3.bf16.msra.mxu0 %v5773_v10  ;;  %5849 = vmatpush3.bf16.msra.mxu1 %v5848_v14 }
 0x291   : > { %5775 = vmatprep.subr.bf16.mxu0 %v8653_v0  ;;  %5850 = vmatprep.subr.bf16.mxu1 %v8653_v0 }
 0x294   : > { %5777 = vmatpush3.bf16.msra.mxu0 %v5776_v12  ;;  %5852 = vmatpush3.bf16.msra.mxu1 %v5851_v13  ;;  %v7672_v12 = vpack.c.bf16 %v1841_v60, %v1838_v17  ;;  %v481_v13 = vld [vmem:[%s7139_s4 + $0x40] sm:$0xff] }
 0x295   : > { %5778 = vmatprep.subr.bf16.mxu0 %v8653_v0  ;;  %5853 = vmatprep.subr.bf16.mxu1 %v8653_v0  ;;  %v1844_v3 = vand.u32 4294901760, %v481_v13 }
 0x297   : > { %4922 = vmatmul.mubr.f32.vlgmr.msra.gmra.mrb[0].mxu1 %v7547_v33  ;;  %v7678_v29 = vpack.c.bf16 %v1847_v28, %v1844_v3  ;;  %v7694_v42 = vsub.f32 %v481_v13, %v1844_v3 }
 0x298   : > { %5780 = vmatpush3.bf16.msra.mxu0 %v5779_v32  ;;  %5855 = vmatpush3.bf16.msra.mxu1 %v7310_v30  ;;  %v483_v32 = vld [vmem:[%s7139_s4 + $0x50] sm:$0xff] }
 0x299   : > { %5781 = vmatprep.subr.bf16.mxu0 %v8653_v0  ;;  %5856 = vmatprep.subr.bf16.mxu1 %v8653_v0  ;;  %8733 = vst [vmem:[#allocation37_spill] sm:$0xff] %v7694_v42 }
 0x29a   : > { %4956 = vmatprep.mubr.msk.f32.mxu1 %vm6791_vm0, %v8644_v1 }
 0x29b   : > { %4817 = vmatmul.mubr.f32.vlgmr.msra.gmra.mrb[2].mxu0 %v7547_v33 }
 0x29c   : > { %5783 = vmatpush3.bf16.msra.mxu0 %v5782_v34  ;;  %5858 = vmatpush3.bf16.msra.mxu1 %v7323_v16  ;;  %v484_v34 = vld [vmem:[%s7139_s4 + $0x58] sm:$0xff] }
 0x29d   : > { %5784 = vmatprep.subr.bf16.mxu0 %v8653_v0  ;;  %5859 = vmatprep.subr.bf16.mxu1 %v8653_v0 }
 0x29e   : > { %4851 = vmatprep.mubr.msk.f32.mxu0 %vm6791_vm0, %v8644_v1 }
 0x2a0   : > { %5786 = vmatpush3.bf16.msra.mxu0 %v5785_v35  ;;  %5861 = vmatpush3.bf16.msra.mxu1 %v7336_v44  ;;  %v4020_v44 = vld [vmem:[%s8727_s13] ss:$0 sm:$0xff]  ;;  %v1850_v35 = vand.u32 4294901760, %v483_v32 }
 0x2a1   : > { %5787 = vmatprep.subr.bf16.mxu0 %v8653_v0  ;;  %5862 = vmatprep.subr.bf16.mxu1 %v8653_v0 }
 0x2a2   : > { %v7700_v11 = vsub.f32 %v483_v32, %v1850_v35 }
 0x2a4   : > { %5789 = vmatpush3.bf16.msra.mxu0 %v5788_v20  ;;  %5864 = vmatpush3.bf16.msra.mxu1 %v7349_v51  ;;  %v1853_v20 = vand.u32 4294901760, %v484_v34  ;;  %8735 = vst [vmem:[#allocation39_spill] sm:$0xff] %v7700_v11 }
 0x2a5   : > { %5790 = vmatprep.subr.bf16.mxu0 %v8653_v0  ;;  %5865 = vmatprep.subr.bf16.mxu1 %v8653_v0 }
 0x2a8   : > { %5792 = vmatpush3.bf16.msra.mxu0 %v5791_v21  ;;  %5867 = vmatpush3.bf16.msra.mxu1 %v7362_v54  ;;  %v474_v54 = vld [vmem:[%s7139_s4 + $0x8] sm:$0xff]  ;;  %v7684_v21 = vpack.c.bf16 %v1853_v20, %v1850_v35 }
 0x2a9   : > { %5793 = vmatprep.subr.bf16.mxu0 %v8653_v0  ;;  %5868 = vmatprep.subr.bf16.mxu1 %v8653_v0 }
 0x2ac   : > { %5795 = vmatpush3.bf16.msra.mxu0 %v5794_v50  ;;  %5870 = vmatpush3.bf16.msra.mxu1 %v7375_v59  ;;  %v1823_v59 = vand.u32 4294901760, %v474_v54  ;;  %v485_v50 = vld [vmem:[%s7139_s4 + $0x60] sm:$0xff] }
 0x2ad   : > { %5796 = vmatprep.subr.bf16.mxu0 %v8653_v0  ;;  %5871 = vmatprep.subr.bf16.mxu1 %v8653_v0 }
 0x2ae   : > { %v7643_v37 = vpack.c.bf16 %v1823_v59, %v1820_v46  ;;  %v7647_v27 = vsub.f32 %v474_v54, %v1823_v59 }
 0x2b0   : > { %5798 = vmatpush3.bf16.msra.mxu0 %v5797_v22  ;;  %5873 = vmatpush3.bf16.msra.mxu1 %v7388_v63  ;;  %v477_v63 = vld [vmem:[%s7139_s4 + $0x20] sm:$0xff]  ;;  %v486_v22 = vld [vmem:[%s7139_s4 + $0x68] sm:$0xff]  ;;  %v8642_v9 = vand.u32 4294901760, %v7647_v27 }
 0x2b1   : > { %5799 = vmatprep.subr.bf16.mxu0 %v8653_v0  ;;  %5874 = vmatprep.subr.bf16.mxu1 %v8653_v0  ;;  %v1832_v62 = vand.u32 4294901760, %v477_v63 }
 0x2b2   : > { %v1921_v43 = vsub.f32 %v7647_v27, %v8642_v9 }
 0x2b3   : > { %v7653_v48 = vsub.f32 %v477_v63, %v1832_v62 }
 0x2b4   : > { %5801 = vmatpush3.bf16.msra.mxu0 %v5800_v23  ;;  %5876 = vmatpush3.bf16.msra.mxu1 %v7471_v38  ;;  %v478_v38 = vld [vmem:[%s7139_s4 + $0x28] sm:$0xff]  ;;  %v1856_v23 = vand.u32 4294901760, %v485_v50  ;;  %v1922_v63 = vand.u32 4294901760, %v1921_v43  ;;  %v8632_v43 = vand.u32 4294901760, %v7700_v11 }
 0x2b5   : > { %5802 = vmatprep.subr.bf16.mxu0 %v8653_v0  ;;  %6021 = vmatprep.subr.bf16.mxu1 %v8653_v0  ;;  %v1835_v4 = vand.u32 4294901760, %v478_v38  ;;  %8729 = vst [vmem:[#allocation33_spill] sm:$0xff] %v7653_v48  ;;  %v8638_v58 = vand.u32 4294901760, %v7653_v48 }
 0x2b7   : > { %4957 = vmatmul.mubr.f32.vlgmr.msra.gmra.mrb[0].mxu1 %v7547_v33  ;;  %v7658_v2 = vsub.f32 %v478_v38, %v1835_v4  ;;  %v7662_v36 = vpack.c.bf16 %v1835_v4, %v1832_v62  ;;  %v7692_v33 = vsub.f32 %v480_v49, %v1841_v60  ;;  %v8640_v38 = vand.u32 4294901760, %v7649_v7 }
 0x2b8   : > { %5804 = vmatpush3.bf16.msra.mxu0 %v5803_v41  ;;  %5201 = vmatprep.mubr.msk.f32.mxu1 %vm6791_vm0, %v8644_v1  ;;  %v1859_v41 = vand.u32 4294901760, %v486_v22  ;;  %v1942_v60 = vsub.f32 %v7653_v48, %v8638_v58 }
 0x2b9   : > { %5877 = vmatprep.subr.bf16.mxu0 %v8653_v0  ;;  %8730 = vst [vmem:[#allocation34_spill] sm:$0xff] %v7658_v2  ;;  %8732 = vst [vmem:[#allocation36_spill] sm:$0xff] %v7692_v33  ;;  %v1928_v4 = vsub.f32 %v7649_v7, %v8640_v38  ;;  %v8637_v49 = vand.u32 4294901760, %v7658_v2  ;;  %v8635_v32 = vand.u32 4294901760, %v7692_v33  ;;  %v2485_v38 = vld [vmem:[#allocation11 + $0x48] sm:$0xff] }
 0x2bb   : > { %4852 = vmatmul.mubr.f32.vlgmr.msra.gmra.mrb[2].mxu0 %v7550_v53  ;;  %v7696_v53 = vsub.f32 %v482_v18, %v1847_v28  ;;  %v1949_v13 = vsub.f32 %v7658_v2, %v8637_v49  ;;  %v1943_v18 = vand.u32 4294901760, %v1942_v60  ;;  %v8636_v28 = vand.u32 4294901760, %v7690_v15 }
 0x2bc   : > { %4991 = vmatprep.mubr.msk.f32.mxu0 %vm6791_vm0, %v8644_v1  ;;  %5879 = vmatpush3.bf16.msra.mxu0 %v7643_v37 }
 0x2bd   : > { %5880 = vmatprep.subr.bf16.mxu0 %v8653_v0  ;;  %8734 = vst [vmem:[#allocation38_spill] sm:$0xff] %v7696_v53  ;;  %v1950_v3 = vand.u32 4294901760, %v1949_v13  ;;  %v1956_v35 = vsub.f32 %v7690_v15, %v8636_v28 }
 0x2c0   : > { %5882 = vmatpush3.bf16.msra.mxu0 %v7656_v26 }
 0x2c1   : > { %5883 = vmatprep.subr.bf16.mxu0 %v8653_v0 }
 0x2c4   : > { %5885 = vmatpush3.bf16.msra.mxu0 %v7662_v36 }
 0x2c5   : > { %5886 = vmatprep.subr.bf16.mxu0 %v8653_v0 }
 0x2c8   : > { %5888 = vmatpush3.bf16.msra.mxu0 %v7672_v12 }
 0x2c9   : > { %5889 = vmatprep.subr.bf16.mxu0 %v8653_v0 }
 0x2cc   : > { %5891 = vmatpush3.bf16.msra.mxu0 %v7678_v29 }
 0x2cd   : > { %5892 = vmatprep.subr.bf16.mxu0 %v8653_v0 }
 0x2d0   : > { %5894 = vmatpush3.bf16.msra.mxu0 %v7684_v21 }
 0x2d1   : > { %5895 = vmatprep.subr.bf16.mxu0 %v8653_v0 }
 0x38a   : > { %v1806_v30 = vpop.f32.mrb[0].mxu1 }
 0x38b   : > { %v4958_v16 = vpop.f32.mrb[1].mxu1 }
 0x38c   : > { %v7704_v16 = vpack.c.bf16 %v1859_v41, %v1856_v23 }
 0x38e   : > { %v1511_v6 = vpop.f32.mrb[2].mxu0  ;;  %5897 = vmatpush3.bf16.msra.mxu0 %v7704_v16 }
 0x38f   : > { %v6309_v5 = vadd.f32 %v4020_v44, %v1511_v6  ;;  %v4853_v51 = vpop.f32.mrb[3].mxu0  ;;  %v7706_v44 = vsub.f32 %v485_v50, %v1856_v23  ;;  %v7708_v6 = vsub.f32 %v486_v22, %v1859_v41  ;;  %5898 = vmatprep.subr.bf16.mxu0 %v8653_v0  ;;  %v1957_v50 = vand.u32 4294901760, %v1956_v35 }
 0x390   : > { %v1865_v51 = vand.u32 4294901760, %v488_v52  ;;  %v8634_v23 = vand.u32 4294901760, %v7694_v42  ;;  %v8633_v41 = vand.u32 4294901760, %v7696_v53 }
 0x391   : > { %v6310_v8 = vadd.f32 %v6309_v5, %v1806_v30  ;;  %v7702_v30 = vsub.f32 %v484_v34, %v1853_v20  ;;  %v1862_v5 = vand.u32 4294901760, %v487_v56  ;;  %v5908_v34 = vpack.c.bf16 %v1950_v3, %v1943_v18 }
 0x392   : > { %v7718_v46 = vsub.f32 %v488_v52, %v1865_v51  ;;  %v1963_v20 = vsub.f32 %v7692_v33, %v8635_v32  ;;  %v1970_v52 = vsub.f32 %v7694_v42, %v8634_v23  ;;  %v8630_v60 = vand.u32 4294901760, %v7706_v44  ;;  %v2483_v32 = vld [vmem:[#allocation11 + $0x38] sm:$0xff] }
 0x393   : > { %1810 = vmax.xlane.f32.xlu0 %v6310_v8  ;;  %8736 = vst [vmem:[#allocation40_spill] sm:$0xff] %v7702_v30  ;;  %v7714_v54 = vpack.c.bf16 %v1865_v51, %v1862_v5  ;;  %v7716_v25 = vsub.f32 %v487_v56, %v1862_v5  ;;  %v1977_v5 = vsub.f32 %v7696_v53, %v8633_v41  ;;  %v8629_v13 = vand.u32 4294901760, %v7708_v6 }
 0x394   : > { %v1964_v22 = vand.u32 4294901760, %v1963_v20  ;;  %v1971_v51 = vand.u32 4294901760, %v1970_v52  ;;  %v1998_v3 = vsub.f32 %v7706_v44, %v8630_v60  ;;  %v8627_v52 = vand.u32 4294901760, %v7718_v46 }
 0x395   : > { %5900 = vmatpush3.bf16.msra.mxu0 %v7714_v54  ;;  %v2005_v35 = vsub.f32 %v7708_v6, %v8629_v13  ;;  %v2514_v49 = vand.u32 4294901760, %v2483_v32 }
 0x396   : > { %5901 = vmatprep.subr.bf16.mxu0 %v8653_v0  ;;  %v5911_v56 = vpack.c.bf16 %v1964_v22, %v1957_v50  ;;  %v1999_v20 = vand.u32 4294901760, %v1998_v3  ;;  %v8628_v22 = vand.u32 4294901760, %v7716_v25  ;;  %v5929_v3 = vpack.c.bf16 %v7651_v47, %v7649_v7 }
 0x397   : > { %v2006_v50 = vand.u32 4294901760, %v2005_v35  ;;  %v5932_v35 = vpack.c.bf16 %v7658_v2, %v7653_v48  ;;  %v8753_v2 = vpack.c.bf16 %v7708_v6, %v7706_v44 }
 0x420   : > { %v1811_v19 = vpop.xlane.xlu0 %1810 }
 0x421   : > { %v1812_v10 = vsub.f32 %v6310_v8, %v1811_v19  ;;  %v8643_v8 = vand.u32 4294901760, %v7645_v39  ;;  %v1935_v19 = vsub.f32 %v7651_v47, %v8639_v55  ;;  %v2484_v55 = vld [vmem:[#allocation11 + $0x40] sm:$0xff] }
 0x422   : > { %v2517_v9 = vand.u32 4294901760, %v2484_v55 }
 0x423   : > { %v1813_v14 = vmul.f32 1.442695, %v1812_v10  ;;  %v1914_v59 = vsub.f32 %v7645_v39, %v8643_v8  ;;  %v1929_v10 = vand.u32 4294901760, %v1928_v4  ;;  %v1984_v4 = vsub.f32 %v7700_v11, %v8632_v43 }
 0x424   : > { %v2520_v8 = vand.u32 4294901760, %v2485_v38 }
 0x425   : > { %6474 = vpow2.f32 %v1813_v14  ;;  %v1915_v57 = vand.u32 4294901760, %v1914_v59  ;;  %v1936_v14 = vand.u32 4294901760, %v1935_v19  ;;  %v1978_v59 = vand.u32 4294901760, %v1977_v5 }
 0x426   : > { %v5920_v5 = vpack.c.bf16 %v2006_v50, %v1999_v20  ;;  %v2488_v50 = vld [vmem:[#allocation11 + $0x60] sm:$0xff]  ;;  %v2489_v20 = vld [vmem:[#allocation11 + $0x68] sm:$0xff] }
 0x427   : > { %v7730_v62 = vpack.c.bf16 %v1922_v63, %v1915_v57  ;;  %v7740_v17 = vpack.c.bf16 %v1936_v14, %v1929_v10  ;;  %v8631_v57 = vand.u32 4294901760, %v7702_v30  ;;  %v5914_v63 = vpack.c.bf16 %v1978_v59, %v1971_v51 }
 0x428   : > { %v1985_v10 = vand.u32 4294901760, %v1984_v4  ;;  %v2012_v51 = vsub.f32 %v7716_v25, %v8628_v22  ;;  %v2019_v59 = vsub.f32 %v7718_v46, %v8627_v52 }
 0x429   : > { %v1991_v19 = vsub.f32 %v7702_v30, %v8631_v57 }
 0x42a   : > { %v2013_v4 = vand.u32 4294901760, %v2012_v51 }
 0x42b   : > { %v1992_v14 = vand.u32 4294901760, %v1991_v19  ;;  %v2020_v19 = vand.u32 4294901760, %v2019_v59 }
 0x42d   : > { %v5917_v18 = vpack.c.bf16 %v1992_v14, %v1985_v10  ;;  %v5923_v10 = vpack.c.bf16 %v2020_v19, %v2013_v4  ;;  %v5926_v14 = vpack.c.bf16 %v7647_v27, %v7645_v39  ;;  %v2487_v4 = vld [vmem:[#allocation11 + $0x58] sm:$0xff] }
 0x42e   : > { %v2526_v51 = vand.u32 4294901760, %v2487_v4 }
 0x42f   : > { %v7667_v24 = vpop.eup %6474 }
 0x430   : > { %1815 = vadd.xlane.f32.xlu0 %v7667_v24 }
 0x4bd   : > { %v1816_v19 = vpop.xlane.xlu0 %1815 }
 0x4be   : > { %6476 = vrcp.f32 %v1816_v19  ;;  %v2482_v19 = vld [vmem:[#allocation11 + $0x30] sm:$0xff] }
 0x4bf   : > { %v2511_v28 = vand.u32 4294901760, %v2482_v19 }
 0x4c8   : > { %v6477_v52 = vpop.eup %6476 }
 0x4c9   : > { %v1818_v22 = vmul.f32 %v6477_v52, %v7667_v24  ;;  %v2476_v24 = vld [vmem:[#allocation11] sm:$0xff] }
 0x4ca   : > { %v2480_v52 = vld [vmem:[#allocation11 + $0x20] sm:$0xff] }
 0x4cb   : > { %v7805_v13 = vand.u32 4294901760, %v1818_v22  ;;  %3776 = vst [vmem:[%s471_s16] sm:$0xff] %v1818_v22 }
 0x4cd   : > { %8737 = vst [vmem:[#allocation41_spill] sm:$0xff] %v7805_v13  ;;  %v7811_v60 = vsub.f32 %v1818_v22, %v7805_v13 }
 0x4cf   : > { %v8641_v57 = vand.u32 4294901760, %v7811_v60 }
 0x4d1   : > { %v1903_v43 = vsub.f32 %v7811_v60, %v8641_v57  ;;  %v7850_v57 = vpack.c.bf16 %v2514_v49, %v2511_v28 }
 0x4d3   : > { %v1904_v41 = vand.u32 4294901760, %v1903_v43  ;;  %8741 = vst [vmem:[#allocation45_spill] sm:$0xff] %v7850_v57 }
 0x4d5   : > { %4992 = vmatmul.mubr.f32.vlgmr.msra.gmra.mrb[4].mxu0 %v1904_v41 }
 0x4d6   : > { %5903 = vmatpush3.bf16.msra.mxu0 %v7730_v62  ;;  %5026 = vmatprep.mubr.msk.f32.mxu0 %vm6791_vm0, %v8644_v1  ;;  %v2477_v62 = vld [vmem:[#allocation11 + $0x8] sm:$0xff] }
 0x4d7   : > { %5904 = vmatprep.subr.bf16.mxu0 %v8653_v0  ;;  %v2496_v41 = vand.u32 4294901760, %v2477_v62 }
 0x4da   : > { %5906 = vmatpush3.bf16.msra.mxu0 %v7740_v17  ;;  %v2493_v17 = vand.u32 4294901760, %v2476_v24 }
 0x4db   : > { %5907 = vmatprep.subr.bf16.mxu0 %v8653_v0 }
 0x4dc   : > { %v7828_v43 = vpack.c.bf16 %v2496_v41, %v2493_v17 }
 0x4de   : > { %5909 = vmatpush3.bf16.msra.mxu0 %v5908_v34  ;;  %8738 = vst [vmem:[#allocation42_spill] sm:$0xff] %v7828_v43  ;;  %v2478_v34 = vld [vmem:[#allocation11 + $0x10] sm:$0xff]  ;;  %6023 = vmatpush3.bf16.msra.mxu1 %v7828_v43 }
 0x4df   : > { %5910 = vmatprep.subr.bf16.mxu0 %v8653_v0  ;;  %6024 = vmatprep.subr.bf16.mxu1 %v8653_v0 }
 0x4e2   : > { %5912 = vmatpush3.bf16.msra.mxu0 %v5911_v56  ;;  %v2479_v56 = vld [vmem:[#allocation11 + $0x18] sm:$0xff] }
 0x4e3   : > { %5913 = vmatprep.subr.bf16.mxu0 %v8653_v0 }
 0x4e6   : > { %5915 = vmatpush3.bf16.msra.mxu0 %v5914_v63  ;;  %v2499_v63 = vand.u32 4294901760, %v2478_v34 }
 0x4e7   : > { %5916 = vmatprep.subr.bf16.mxu0 %v8653_v0 }
 0x4e8   : > { %v7864_v61 = vsub.f32 %v2478_v34, %v2499_v63 }
 0x4ea   : > { %5918 = vmatpush3.bf16.msra.mxu0 %v5917_v18  ;;  %v2502_v18 = vand.u32 4294901760, %v2479_v56  ;;  %v2600_v45 = vand.u32 4294901760, %v7864_v61 }
 0x4eb   : > { %5919 = vmatprep.subr.bf16.mxu0 %v8653_v0 }
 0x4ec   : > { %v7834_v22 = vpack.c.bf16 %v2502_v18, %v2499_v63  ;;  %v2529_v63 = vand.u32 4294901760, %v2488_v50 }
 0x4ee   : > { %5921 = vmatpush3.bf16.msra.mxu0 %v5920_v5  ;;  %8739 = vst [vmem:[#allocation43_spill] sm:$0xff] %v7834_v22  ;;  %v2481_v5 = vld [vmem:[#allocation11 + $0x28] sm:$0xff]  ;;  %6026 = vmatpush3.bf16.msra.mxu1 %v7834_v22 }
 0x4ef   : > { %5922 = vmatprep.subr.bf16.mxu0 %v8653_v0  ;;  %v2508_v23 = vand.u32 4294901760, %v2481_v5  ;;  %6027 = vmatprep.subr.bf16.mxu1 %v8653_v0 }
 0x4f2   : > { %5924 = vmatpush3.bf16.msra.mxu0 %v5923_v10  ;;  %v2505_v10 = vand.u32 4294901760, %v2480_v52 }
 0x4f3   : > { %5925 = vmatprep.subr.bf16.mxu0 %v8653_v0 }
 0x4f4   : > { %v7841_v58 = vpack.c.bf16 %v2508_v23, %v2505_v10 }
 0x4f5   : > { %5027 = vmatmul.mubr.f32.vlgmr.msra.gmra.mrb[4].mxu0 %v7805_v13  ;;  %v8747_v13 = vmov 0.0|0.0  }
 0x4f6   : > { %5927 = vmatpush3.bf16.msra.mxu0 %v5926_v14  ;;  %5061 = vmatprep.mubr.msk.f32.mxu0 %vm6791_vm0, %v8644_v1  ;;  %8740 = vst [vmem:[#allocation44_spill] sm:$0xff] %v7841_v58  ;;  %v7846_v14 = vsub.f32 %v2476_v24, %v2493_v17  ;;  %v2486_v1 = vld [vmem:[#allocation11 + $0x50] sm:$0xff]  ;;  %v7858_v24 = vsub.f32 %v2477_v62, %v2496_v41 }
 0x4f7   : > { %5928 = vmatprep.subr.bf16.mxu0 %v8653_v0  ;;  %6029 = vmatpush3.bf16.msra.mxu1 %v7841_v58  ;;  %v7861_v17 = vpack.c.bf16 %v2520_v8, %v2517_v9  ;;  %v2523_v59 = vand.u32 4294901760, %v2486_v1  ;;  %v7871_v62 = vsub.f32 %v2480_v52, %v2505_v10  ;;  %v7873_v41 = vsub.f32 %v2481_v5, %v2508_v23  ;;  %v2491_v58 = vld [vmem:[#allocation11 + $0x78] sm:$0xff] }
 0x4f8   : > { %6030 = vmatprep.subr.bf16.mxu1 %v8653_v0  ;;  %v8746_v22 = vand.u32 4294901760, %v7846_v14  ;;  %v7885_v23 = vsub.f32 %v2483_v32, %v2514_v49  ;;  %v7888_v52 = vsub.f32 %v2484_v55, %v2517_v9  ;;  %v7890_v5 = vsub.f32 %v2485_v38, %v2520_v8 }
 0x4f9   : > { %8742 = vst [vmem:[#allocation46_spill] sm:$0xff] %v7861_v17  ;;  %8744 = vst [vmem:[#allocation47_spill] sm:$0xff] %v7871_v62  ;;  %v7880_v34 = vpack.c.bf16 %v2526_v51, %v2523_v59  ;;  %v2538_v10 = vand.u32 4294901760, %v2491_v58  ;;  %v2614_v49 = vand.u32 4294901760, %v7871_v62  ;;  %v7900_v9 = vsub.f32 %v2486_v1, %v2523_v59 }
 0x4fa   : > { %5930 = vmatpush3.bf16.msra.mxu0 %v5929_v3  ;;  %v7869_v3 = vsub.f32 %v2479_v56, %v2502_v18  ;;  %8745 = vst [vmem:[#allocation48_spill] sm:$0xff] %v7873_v41  ;;  %v2593_v56 = vand.u32 4294901760, %v7858_v24  ;;  %v7883_v18 = vsub.f32 %v2482_v19, %v2511_v28  ;;  %v2621_v55 = vand.u32 4294901760, %v7873_v41 }
 0x4fb   : > { %5931 = vmatprep.subr.bf16.mxu0 %v8653_v0  ;;  %6032 = vmatpush3.bf16.msra.mxu1 %v7850_v57  ;;  %v2490_v57 = vld [vmem:[#allocation11 + $0x70] sm:$0xff]  ;;  %8748 = vst [vmem:[#allocation49_spill] sm:$0xff] %v7880_v34  ;;  %v7906_v32 = vsub.f32 %v2487_v4, %v2526_v51  ;;  %v7917_v1 = vsub.f32 %v2491_v58, %v2538_v10 }
 0x4fc   : > { %6033 = vmatprep.subr.bf16.mxu1 %v8653_v0  ;;  %v2607_v28 = vand.u32 4294901760, %v7869_v3  ;;  %v2594_v38 = vsub.f32 %v7858_v24, %v2593_v56  ;;  %v2628_v59 = vand.u32 4294901760, %v7883_v18  ;;  %v8751_v51 = vpack.c.bf16 %v7702_v30, %v7700_v11 }
 0x4fd   : > { %v2601_v4 = vsub.f32 %v7864_v61, %v2600_v45 }
 0x4fe   : > { %5933 = vmatpush3.bf16.msra.mxu0 %v5932_v35  ;;  %v8743_v35 = vpack.c.bf16 %v7692_v33, %v7690_v15  ;;  %v2595_v58 = vand.u32 4294901760, %v2594_v38  ;;  %v8752_v38 = vand.u32 4294901760, %v7846_v14  ;;  %v7943_v33 = vpack.c.bf16 %v2607_v28, %v2600_v45 }
 0x4ff   : > { %5934 = vmatprep.subr.bf16.mxu0 %v8653_v0  ;;  %v2587_v0 = vsub.f32 %v7846_v14, %v8746_v22  ;;  %6035 = vmatpush3.bf16.msra.mxu1 %v7861_v17  ;;  %v2535_v22 = vand.u32 4294901760, %v2490_v57  ;;  %v8749_v17 = vpack.c.bf16 %v7696_v53, %v7694_v42  ;;  %v2691_v42 = vand.u32 4294901760, %v7917_v1 }
 0x500   : > { %6036 = vmatprep.subr.bf16.mxu1 %v8747_v13  ;;  %v7945_v15 = vpack.c.bf16 %v2621_v55, %v2614_v49 }
 0x501   : > { %v2588_v43 = vand.u32 4294901760, %v2587_v0  ;;  %v7909_v0 = vsub.f32 %v2488_v50, %v2529_v63  ;;  %v7915_v53 = vpack.c.bf16 %v2538_v10, %v2535_v22  ;;  %v2608_v50 = vsub.f32 %v7869_v3, %v2607_v28 }
 0x502   : > { %5936 = vmatpush3.bf16.msra.mxu0 %v8743_v35  ;;  %v2532_v35 = vand.u32 4294901760, %v2489_v20  ;;  %v2663_v10 = vand.u32 4294901760, %v7906_v32 }
 0x503   : > { %5937 = vmatprep.subr.bf16.mxu0 %v8747_v13  ;;  %6038 = vmatpush3.bf16.msra.mxu1 %v7880_v34  ;;  %v2635_v34 = vand.u32 4294901760, %v7885_v23  ;;  %v6046_v45 = vpack.c.bf16 %v2595_v58, %v2588_v43  ;;  %v2609_v28 = vand.u32 4294901760, %v2608_v50 }
 0x504   : > { %v7902_v8 = vpack.c.bf16 %v2532_v35, %v2529_v63  ;;  %6039 = vmatprep.subr.bf16.mxu1 %v8747_v13  ;;  %v7911_v19 = vsub.f32 %v2489_v20, %v2532_v35  ;;  %v2615_v20 = vsub.f32 %v7871_v62, %v2614_v49  ;;  %v2622_v63 = vsub.f32 %v7873_v41, %v2621_v55 }
 0x505   : > { %v2649_v35 = vand.u32 4294901760, %v7890_v5  ;;  %v7950_v48 = vpack.c.bf16 %v2635_v34, %v2628_v59  ;;  %v2629_v55 = vsub.f32 %v7883_v18, %v2628_v59  ;;  %v2636_v58 = vsub.f32 %v7885_v23, %v2635_v34 }
 0x506   : > { %5939 = vmatpush3.bf16.msra.mxu0 %v8749_v17  ;;  %8750 = vst [vmem:[#allocation50_spill] sm:$0xff] %v7902_v8  ;;  %v7913_v17 = vsub.f32 %v2490_v57, %v2535_v22  ;;  %v2642_v57 = vand.u32 4294901760, %v7888_v52  ;;  %v2656_v22 = vand.u32 4294901760, %v7900_v9  ;;  %v2677_v30 = vand.u32 4294901760, %v7911_v19 }
 0x507   : > { %5940 = vmatprep.subr.bf16.mxu0 %v8747_v13  ;;  %6041 = vmatpush3.bf16.msra.mxu1 %v7902_v8  ;;  %v7941_v8 = vpack.c.bf16 %v2593_v56, %v8752_v38  ;;  %v2602_v56 = vand.u32 4294901760, %v2601_v4  ;;  %v2616_v4 = vand.u32 4294901760, %v2615_v20  ;;  %v2623_v50 = vand.u32 4294901760, %v2622_v63 }
 0x508   : > { %6042 = vmatprep.subr.bf16.mxu1 %v8747_v13  ;;  %v2684_v11 = vand.u32 4294901760, %v7913_v17  ;;  %v7952_v41 = vpack.c.bf16 %v2649_v35, %v2642_v57  ;;  %v7954_v62 = vpack.c.bf16 %v2663_v10, %v2656_v22  ;;  %v8755_v38 = vmov 0.0  }
 0x509   : > { %v6049_v43 = vpack.c.bf16 %v2609_v28, %v2602_v56  ;;  %v6052_v59 = vpack.c.bf16 %v2623_v50, %v2616_v4  ;;  %v2630_v20 = vand.u32 4294901760, %v2629_v55  ;;  %v2637_v34 = vand.u32 4294901760, %v2636_v58 }
 0x50a   : > { %5942 = vmatpush3.bf16.msra.mxu0 %v8751_v51  ;;  %v2670_v51 = vand.u32 4294901760, %v7909_v0  ;;  %v7962_v49 = vpack.c.bf16 %v2691_v42, %v2684_v11  ;;  %v2650_v63 = vsub.f32 %v7890_v5, %v2649_v35  ;;  %v2678_v50 = vsub.f32 %v7911_v19, %v2677_v30 }
 0x50b   : > { %5943 = vmatprep.subr.bf16.mxu0 %v8747_v13  ;;  %6044 = vmatpush3.bf16.msra.mxu1 %v7915_v53  ;;  %v6055_v56 = vpack.c.bf16 %v2637_v34, %v2630_v20  ;;  %v8756_v34 = vand.u32 4294901760, %v7645_v39  ;;  %v8029_v39 = vld [vmem:[#allocation10 + $0x10] sm:$0xff] }
 0x50c   : > { %v7956_v47 = vpack.c.bf16 %v2677_v30, %v2670_v51  ;;  %6045 = vmatprep.subr.bf16.mxu1 %v8747_v13  ;;  %v2651_v28 = vand.u32 4294901760, %v2650_v63  ;;  %v2671_v35 = vsub.f32 %v7909_v0, %v2670_v51  ;;  %v2679_v51 = vand.u32 4294901760, %v2678_v50 }
 0x50d   : > { %v8757_v63 = vand.u32 4294901760, %v7647_v27  ;;  %v8031_v27 = vld [vmem:[#allocation10 + $0x18] sm:$0xff] }
 0x50e   : > { %5945 = vmatpush3.bf16.msra.mxu0 %v8753_v2  ;;  %v8754_v2 = vpack.c.bf16 %v7718_v46, %v7716_v25  ;;  %5202 = vmatmul.mubr.f32.vlgmr.msra.gmra.mrb[2].mxu1 %v7271_v40  ;;  %v2643_v40 = vsub.f32 %v7888_v52, %v2642_v57  ;;  %v2657_v57 = vsub.f32 %v7900_v9, %v2656_v22  ;;  %v2672_v58 = vand.u32 4294901760, %v2671_v35 }
 0x50f   : > { %5946 = vmatprep.subr.bf16.mxu0 %v8747_v13  ;;  %6047 = vmatpush3.bf16.msra.mxu1 %v6046_v45  ;;  %v2685_v22 = vsub.f32 %v7913_v17, %v2684_v11  ;;  %v3140_v35 = vand.u32 4294901760, %v8029_v39 }
 0x510   : > { %6048 = vmatprep.subr.bf16.mxu1 %v8747_v13  ;;  %5236 = vmatprep.mubr.msk.f32.mxu1 %vm6791_vm0, %v8755_v38  ;;  %v2644_v45 = vand.u32 4294901760, %v2643_v40  ;;  %v2692_v40 = vsub.f32 %v7917_v1, %v2691_v42  ;;  %v6064_v30 = vpack.c.bf16 %v2679_v51, %v2672_v58  ;;  %v6070_v42 = vpack.c.bf16 %v7858_v24, %v7846_v14 }
 0x511   : > { %v6073_v14 = vpack.c.bf16 %v7869_v3, %v7864_v61  ;;  %v8059_v51 = vsub.f32 %v8029_v39, %v3140_v35  ;;  %v2474_v39 = vld [vmem:[#allocation10 + $0x70] sm:$0xff] }
 0x512   : > { %5948 = vmatpush3.bf16.msra.mxu0 %v8754_v2  ;;  %v2664_v2 = vsub.f32 %v7906_v32, %v2663_v10  ;;  %v6058_v55 = vpack.c.bf16 %v2651_v28, %v2644_v45  ;;  %v2693_v11 = vand.u32 4294901760, %v2692_v40  ;;  %v5974_v45 = vpack.c.bf16 %v8757_v63, %v8756_v34  ;;  %v8019_v28 = vld [vmem:[#allocation10 + $0x8] sm:$0xff]  ;;  %v8067_v40 = vld [vmem:[#allocation10 + $0x20] sm:$0xff] }
 0x513   : > { %5949 = vmatprep.subr.bf16.mxu0 %v8747_v13  ;;  %6050 = vmatpush3.bf16.msra.mxu1 %v6049_v43  ;;  %v2658_v43 = vand.u32 4294901760, %v2657_v57  ;;  %v3137_v57 = vand.u32 4294901760, %v8019_v28  ;;  %v8766_v34 = vld [vmem:[#allocation34_spill] sm:$0xff] }
 0x514   : > { %6051 = vmatprep.subr.bf16.mxu1 %v8747_v13  ;;  %v2665_v4 = vand.u32 4294901760, %v2664_v2  ;;  %v8758_v2 = vand.u32 4294901760, %v7811_v60  ;;  %v8767_v63 = vand.u32 4294901760, %v8766_v34 }
 0x515   : > { %5062 = vmatmul.mubr.f32.vlgmr.msra.gmra.mrb[4].mxu0 %v7811_v60  ;;  %v8043_v3 = vsub.f32 %v8019_v28, %v3137_v57  ;;  %v8683_v60 = vand.u32 4294901760, %v8031_v27 }
 0x516   : > { %5951 = vmatpush3.bf16.msra.mxu0 %v7643_v37  ;;  %5096 = vmatprep.mubr.msk.f32.mxu0 %vm6791_vm0, %v8755_v38  ;;  %v6061_v10 = vpack.c.bf16 %v2665_v4, %v2658_v43  ;;  %v8760_v43 = vld [vmem:[#allocation32_spill] sm:$0xff] }
 0x517   : > { %5952 = vmatprep.subr.bf16.mxu0 %v8747_v13  ;;  %6053 = vmatpush3.bf16.msra.mxu1 %v6052_v59  ;;  %v2686_v59 = vand.u32 4294901760, %v2685_v22  ;;  %v8761_v4 = vand.u32 4294901760, %v8760_v43  ;;  %v8762_v22 = vld [vmem:[#allocation47_spill] sm:$0xff]  ;;  %v8091_v43 = vld [vmem:[#allocation10 + $0x30] sm:$0xff] }
 0x518   : > { %6054 = vmatprep.subr.bf16.mxu1 %v8747_v13 }
 0x519   : > { %v6067_v20 = vpack.c.bf16 %v2693_v11, %v2686_v59  ;;  %v8681_v59 = vand.u32 4294901760, %v8067_v40 }
 0x51a   : > { %5954 = vmatpush3.bf16.msra.mxu0 %v7656_v26 }
 0x51b   : > { %5955 = vmatprep.subr.bf16.mxu0 %v8747_v13  ;;  %6056 = vmatpush3.bf16.msra.mxu1 %v6055_v56  ;;  %v8017_v56 = vld [vmem:[#allocation10] sm:$0xff] }
 0x51c   : > { %6057 = vmatprep.subr.bf16.mxu1 %v8747_v13  ;;  %v3134_v24 = vand.u32 4294901760, %v8017_v56 }
 0x51e   : > { %5957 = vmatpush3.bf16.msra.mxu0 %v7662_v36  ;;  %v8038_v61 = vsub.f32 %v8017_v56, %v3134_v24  ;;  %v2473_v56 = vld [vmem:[#allocation10 + $0x68] sm:$0xff] }
 0x51f   : > { %5958 = vmatprep.subr.bf16.mxu0 %v8747_v13  ;;  %6059 = vmatpush3.bf16.msra.mxu1 %v6058_v55  ;;  %v8759_v55 = vand.u32 4294901760, %v7649_v7  ;;  %v8065_v7 = vsub.f32 %v8031_v27, %v8683_v60 }
 0x520   : > { %6060 = vmatprep.subr.bf16.mxu1 %v8747_v13 }
 0x521   : > { %v5977_v50 = vpack.c.bf16 %v8761_v4, %v8759_v55  ;;  %v8093_v4 = vld [vmem:[#allocation10 + $0x38] sm:$0xff] }
 0x522   : > { %5960 = vmatpush3.bf16.msra.mxu0 %v7672_v12 }
 0x523   : > { %5961 = vmatprep.subr.bf16.mxu0 %v8747_v13  ;;  %6062 = vmatpush3.bf16.msra.mxu1 %v6061_v10  ;;  %v8763_v10 = vld [vmem:[#allocation48_spill] sm:$0xff] }
 0x524   : > { %6063 = vmatprep.subr.bf16.mxu1 %v8747_v13  ;;  %v6076_v58 = vpack.c.bf16 %v8763_v10, %v8762_v22  ;;  %v8770_v10 = vld [vmem:[#allocation36_spill] sm:$0xff] }
 0x526   : > { %5963 = vmatpush3.bf16.msra.mxu0 %v7678_v29 }
 0x527   : > { %5964 = vmatprep.subr.bf16.mxu0 %v8747_v13  ;;  %6065 = vmatpush3.bf16.msra.mxu1 %v6064_v30  ;;  %v8069_v30 = vld [vmem:[#allocation10 + $0x28] sm:$0xff] }
 0x528   : > { %6066 = vmatprep.subr.bf16.mxu1 %v8747_v13  ;;  %v8679_v11 = vand.u32 4294901760, %v8069_v30 }
 0x52a   : > { %5966 = vmatpush3.bf16.msra.mxu0 %v7684_v21  ;;  %v8088_v55 = vsub.f32 %v8069_v30, %v8679_v11 }
 0x52b   : > { %5967 = vmatprep.subr.bf16.mxu0 %v8747_v13  ;;  %6068 = vmatpush3.bf16.msra.mxu1 %v6067_v20  ;;  %v8764_v20 = vld [vmem:[#allocation33_spill] sm:$0xff] }
 0x52c   : > { %6069 = vmatprep.subr.bf16.mxu1 %v8747_v13 }
 0x52e   : > { %5969 = vmatpush3.bf16.msra.mxu0 %v7704_v16  ;;  %5237 = vmatmul.mubr.f32.vlgmr.msra.gmra.mrb[2].mxu1 %v7181_v31 }
 0x52f   : > { %5970 = vmatprep.subr.bf16.mxu0 %v8747_v13  ;;  %6071 = vmatpush3.bf16.msra.mxu1 %v6070_v42  ;;  %v8765_v42 = vand.u32 4294901760, %v8764_v20 }
 0x530   : > { %6072 = vmatprep.subr.bf16.mxu1 %v8747_v13  ;;  %5271 = vmatprep.mubr.msk.f32.mxu1 %vm6791_vm0, %v8755_v38 }
 0x532   : > { %5972 = vmatpush3.bf16.msra.mxu0 %v7714_v54 }
 0x533   : > { %5973 = vmatprep.subr.bf16.mxu0 %v8747_v13  ;;  %6074 = vmatpush3.bf16.msra.mxu1 %v6073_v14  ;;  %v6079_v14 = vpack.c.bf16 %v7885_v23, %v7883_v18  ;;  %v8678_v18 = vand.u32 4294901760, %v8093_v4  ;;  %v8768_v23 = vld [vmem:[#allocation35_spill] sm:$0xff] }
 0x534   : > { %6075 = vmatprep.subr.bf16.mxu1 %v8747_v13  ;;  %v8769_v22 = vand.u32 4294901760, %v8768_v23  ;;  %v8117_v23 = vld [vmem:[#allocation10 + $0x48] sm:$0xff] }
 0x535   : > { %5097 = vmatmul.mubr.f32.vlgmr.msra.gmra.mrb[4].mxu0 %v8758_v2  ;;  %v8083_v2 = vsub.f32 %v8067_v40, %v8681_v59 }
 0x536   : > { %5975 = vmatpush3.bf16.msra.mxu0 %v5974_v45  ;;  %5131 = vmatprep.mubr.msk.f32.mxu0 %vm6791_vm0, %v8755_v38  ;;  %v5980_v45 = vpack.c.bf16 %v8767_v63, %v8765_v42  ;;  %v6082_v42 = vpack.c.bf16 %v7890_v5, %v7888_v52  ;;  %v8112_v63 = vsub.f32 %v8093_v4, %v8678_v18  ;;  %v8682_v52 = vand.u32 4294901760, %v8117_v23  ;;  %v8772_v5 = vld [vmem:[#allocation37_spill] sm:$0xff] }
 0x537   : > { %5976 = vmatprep.subr.bf16.mxu0 %v8747_v13  ;;  %6077 = vmatpush3.bf16.msra.mxu1 %v6076_v58  ;;  %v8771_v58 = vand.u32 4294901760, %v8770_v10  ;;  %v8774_v10 = vld [vmem:[#allocation38_spill] sm:$0xff]  ;;  %v6085_v18 = vpack.c.bf16 %v7906_v32, %v7900_v9  ;;  %v8776_v32 = vld [vmem:[#allocation39_spill] sm:$0xff] }
 0x538   : > { %6078 = vmatprep.subr.bf16.mxu1 %v8747_v13 }
 0x539   : > { %v5983_v20 = vpack.c.bf16 %v8771_v58, %v8769_v22  ;;  %v8773_v22 = vand.u32 4294901760, %v8772_v5  ;;  %v8775_v58 = vand.u32 4294901760, %v8774_v10  ;;  %v8139_v5 = vld [vmem:[#allocation10 + $0x50] sm:$0xff]  ;;  %v8777_v10 = vand.u32 4294901760, %v8776_v32 }
 0x53a   : > { %5978 = vmatpush3.bf16.msra.mxu0 %v5977_v50  ;;  %v8677_v50 = vand.u32 4294901760, %v8091_v43 }
 0x53b   : > { %5979 = vmatprep.subr.bf16.mxu0 %v8747_v13  ;;  %6080 = vmatpush3.bf16.msra.mxu1 %v6079_v14 }
 0x53c   : > { %v8107_v34 = vsub.f32 %v8091_v43, %v8677_v50  ;;  %6081 = vmatprep.subr.bf16.mxu1 %v8747_v13  ;;  %v5986_v50 = vpack.c.bf16 %v8775_v58, %v8773_v22  ;;  %v8141_v22 = vld [vmem:[#allocation10 + $0x58] sm:$0xff]  ;;  %v8778_v58 = vld [vmem:[#allocation40_spill] sm:$0xff] }
 0x53d   : > { %v3167_v9 = vand.u32 4294901760, %v8141_v22 }
 0x53e   : > { %5981 = vmatpush3.bf16.msra.mxu0 %v5980_v45  ;;  %v8115_v45 = vld [vmem:[#allocation10 + $0x40] sm:$0xff] }
 0x53f   : > { %5982 = vmatprep.subr.bf16.mxu0 %v8747_v13  ;;  %v8680_v14 = vand.u32 4294901760, %v8115_v45  ;;  %6083 = vmatpush3.bf16.msra.mxu1 %v6082_v42  ;;  %v3164_v42 = vand.u32 4294901760, %v8139_v5 }
 0x540   : > { %6084 = vmatprep.subr.bf16.mxu1 %v8747_v13 }
 0x541   : > { %v8131_v11 = vsub.f32 %v8115_v45, %v8680_v14  ;;  %v8779_v14 = vand.u32 4294901760, %v8778_v58  ;;  %v8155_v60 = vsub.f32 %v8139_v5, %v3164_v42  ;;  %v3241_v5 = vand.u32 4294901760, %v8059_v51 }
 0x542   : > { %5984 = vmatpush3.bf16.msra.mxu0 %v5983_v20  ;;  %v8136_v20 = vsub.f32 %v8117_v23, %v8682_v52  ;;  %v6088_v52 = vpack.c.bf16 %v7911_v19, %v7909_v0  ;;  %v6091_v0 = vpack.c.bf16 %v7917_v1, %v7913_v17  ;;  %v8782_v19 = vand.u32 4294901760, %v7716_v25  ;;  %v8786_v25 = vld [vmem:[#allocation41_spill] sm:$0xff]  ;;  %v8788_v17 = vld [vmem:[#allocation44_spill] sm:$0xff]  ;;  %v8790_v1 = vld [vmem:[#allocation46_spill] sm:$0xff] }
 0x543   : > { %5985 = vmatprep.subr.bf16.mxu0 %v8747_v13  ;;  %v5989_v59 = vpack.c.bf16 %v8779_v14, %v8777_v10  ;;  %6086 = vmatpush3.bf16.msra.mxu1 %v6085_v18  ;;  %v8780_v14 = vand.u32 4294901760, %v7706_v44  ;;  %v8781_v18 = vand.u32 4294901760, %v7708_v6  ;;  %v8783_v10 = vand.u32 4294901760, %v7718_v46  ;;  %v8784_v44 = vld [vmem:[#allocation30_spill] sm:$0xff]  ;;  %v8787_v46 = vld [vmem:[#allocation43_spill] sm:$0xff] }
 0x544   : > { %6087 = vmatprep.subr.bf16.mxu1 %v8747_v13  ;;  %v8785_v6 = vld [vmem:[#allocation42_spill] sm:$0xff] }
 0x545   : > { %v5992_v32 = vpack.c.bf16 %v8781_v18, %v8780_v14  ;;  %v5995_v58 = vpack.c.bf16 %v8783_v10, %v8782_v19 }
 0x546   : > { %5987 = vmatpush3.bf16.msra.mxu0 %v5986_v50  ;;  %v8160_v50 = vsub.f32 %v8141_v22, %v3167_v9  ;;  %v3248_v22 = vand.u32 4294901760, %v8065_v7 }
 0x547   : > { %5988 = vmatprep.subr.bf16.mxu0 %v8747_v13  ;;  %6089 = vmatpush3.bf16.msra.mxu1 %v6088_v52 }
 0x548   : > { %6090 = vmatprep.subr.bf16.mxu1 %v8747_v13  ;;  %v3249_v19 = vsub.f32 %v8065_v7, %v3248_v22 }
 0x54a   : > { %5990 = vmatpush3.bf16.msra.mxu0 %v5989_v59  ;;  %v3234_v59 = vand.u32 4294901760, %v8043_v3 }
 0x54b   : > { %5991 = vmatprep.subr.bf16.mxu0 %v8747_v13  ;;  %6092 = vmatpush3.bf16.msra.mxu1 %v6091_v0  ;;  %v3242_v0 = vsub.f32 %v8059_v51, %v3241_v5 }
 0x54c   : > { %6093 = vmatprep.subr.bf16.mxu1 %v8747_v13 }
 0x54d   : > { %v3243_v10 = vand.u32 4294901760, %v3242_v0 }
 0x54e   : > { %5993 = vmatpush3.bf16.msra.mxu0 %v5992_v32  ;;  %5272 = vmatmul.mubr.f32.vlgmr.msra.gmra.mrb[2].mxu1 %v8784_v44  ;;  %v3255_v44 = vand.u32 4294901760, %v8083_v2 }
 0x54f   : > { %5994 = vmatprep.subr.bf16.mxu0 %v8747_v13  ;;  %6095 = vmatpush3.bf16.msra.mxu1 %v8785_v6 }
 0x550   : > { %6096 = vmatprep.subr.bf16.mxu1 %v8747_v13  ;;  %5306 = vmatprep.mubr.msk.f32.mxu1 %vm6791_vm0, %v8755_v38 }
 0x552   : > { %5996 = vmatpush3.bf16.msra.mxu0 %v5995_v58  ;;  %v3250_v58 = vand.u32 4294901760, %v3249_v19 }
 0x553   : > { %5997 = vmatprep.subr.bf16.mxu0 %v8747_v13  ;;  %6098 = vmatpush3.bf16.msra.mxu1 %v8787_v46 }
 0x554   : > { %6099 = vmatprep.subr.bf16.mxu1 %v8747_v13 }
 0x555   : > { %5132 = vmatmul.mubr.f32.vlgmr.msra.gmra.mrb[4].mxu0 %v8786_v25 }
 0x556   : > { %5999 = vmatpush3.bf16.msra.mxu0 %v7643_v37  ;;  %5166 = vmatprep.mubr.msk.f32.mxu0 %vm6791_vm0, %v8755_v38  ;;  %v8789_v37 = vld [vmem:[#allocation45_spill] sm:$0xff] }
 0x557   : > { %6000 = vmatprep.subr.bf16.mxu0 %v8747_v13  ;;  %6101 = vmatpush3.bf16.msra.mxu1 %v8788_v17 }
 0x558   : > { %6102 = vmatprep.subr.bf16.mxu1 %v8747_v13 }
 0x55a   : > { %6002 = vmatpush3.bf16.msra.mxu0 %v7656_v26  ;;  %v8791_v26 = vld [vmem:[#allocation49_spill] sm:$0xff] }
 0x55b   : > { %6003 = vmatprep.subr.bf16.mxu0 %v8747_v13  ;;  %6104 = vmatpush3.bf16.msra.mxu1 %v8789_v37 }
 0x55c   : > { %6105 = vmatprep.subr.bf16.mxu1 %v8747_v13 }
 0x55e   : > { %6005 = vmatpush3.bf16.msra.mxu0 %v7662_v36  ;;  %v8792_v36 = vld [vmem:[#allocation50_spill] sm:$0xff] }
 0x55f   : > { %6006 = vmatprep.subr.bf16.mxu0 %v8747_v13  ;;  %6107 = vmatpush3.bf16.msra.mxu1 %v8790_v1 }
 0x560   : > { %6108 = vmatprep.subr.bf16.mxu1 %v8747_v13 }
 0x562   : > { %6008 = vmatpush3.bf16.msra.mxu0 %v7672_v12  ;;  %v8793_v12 = vld [vmem:[#allocation31_spill] sm:$0xff] }
 0x563   : > { %6009 = vmatprep.subr.bf16.mxu0 %v8747_v13  ;;  %6110 = vmatpush3.bf16.msra.mxu1 %v8791_v26 }
 0x564   : > { %6111 = vmatprep.subr.bf16.mxu1 %v8747_v13 }
 0x566   : > { %6011 = vmatpush3.bf16.msra.mxu0 %v7678_v29 }
 0x567   : > { %6012 = vmatprep.subr.bf16.mxu0 %v8747_v13  ;;  %6113 = vmatpush3.bf16.msra.mxu1 %v8792_v36 }
 0x568   : > { %6114 = vmatprep.subr.bf16.mxu1 %v8747_v13 }
 0x56a   : > { %6014 = vmatpush3.bf16.msra.mxu0 %v7684_v21  ;;  %v8795_v21 = vand.u32 4294901760, %v8067_v40 }
 0x56b   : > { %6015 = vmatprep.subr.bf16.mxu0 %v8747_v13  ;;  %6116 = vmatpush3.bf16.msra.mxu1 %v7915_v53 }
 0x56c   : > { %6117 = vmatprep.subr.bf16.mxu1 %v8747_v13 }
 0x56e   : > { %6017 = vmatpush3.bf16.msra.mxu0 %v7704_v16  ;;  %5307 = vmatmul.mubr.f32.vlgmr.msra.gmra.mrb[2].mxu1 %v8793_v12 }
 0x56f   : > { %6018 = vmatprep.subr.bf16.mxu0 %v8747_v13  ;;  %6119 = vmatpush3.bf16.msra.mxu1 %v7941_v8  ;;  %v8300_v8 = vpack.c.bf16 %v3167_v9, %v3164_v42 }
 0x570   : > { %5341 = vmatprep.mubr.msk.f32.mxu1 %vm6791_vm0, %v8755_v38  ;;  %6120 = vmatprep.subr.bf16.mxu1 %v8747_v13 }
 0x572   : > { %6020 = vmatpush3.bf16.msra.mxu0 %v7714_v54  ;;  %v8799_v54 = vand.u32 4294901760, %v8115_v45  ;;  %v3235_v45 = vsub.f32 %v8043_v3, %v3234_v59 }
 0x573   : > { %6122 = vmatpush3.bf16.msra.mxu1 %v7943_v33  ;;  %v8797_v33 = vand.u32 4294901760, %v8091_v43 }
 0x574   : > { %6123 = vmatprep.subr.bf16.mxu1 %v8747_v13  ;;  %v3236_v52 = vand.u32 4294901760, %v3235_v45 }
 0x575   : > { %5167 = vmatmul.mubr.f32.vlgmr.msra.gmra.mrb[4].mxu0 %v8786_v25  ;;  %v6193_v25 = vpack.c.bf16 %v3250_v58, %v3243_v10 }
 0x577   : > { %6125 = vmatpush3.bf16.msra.mxu1 %v7945_v15  ;;  %v8796_v15 = vand.u32 4294901760, %v8069_v30  ;;  %v3227_v30 = vand.u32 4294901760, %v8038_v61 }
 0x578   : > { %6126 = vmatprep.subr.bf16.mxu1 %v8747_v13 }
 0x57b   : > { %6128 = vmatpush3.bf16.msra.mxu1 %v7950_v48  ;;  %v8794_v48 = vand.u32 4294901760, %v8031_v27  ;;  %v2475_v27 = vld [vmem:[#allocation10 + $0x78] sm:$0xff] }
 0x57c   : > { %6129 = vmatprep.subr.bf16.mxu1 %v8747_v13  ;;  %v3179_v40 = vand.u32 4294901760, %v2475_v27 }
 0x57d   : > { %v8266_v29 = vpack.c.bf16 %v8794_v48, %v3140_v35  ;;  %v3176_v35 = vand.u32 4294901760, %v2474_v39 }
 0x57e   : > { %v8329_v18 = vsub.f32 %v2475_v27, %v3179_v40  ;;  %v3304_v27 = vand.u32 4294901760, %v8160_v50 }
 0x57f   : > { %6131 = vmatpush3.bf16.msra.mxu1 %v7952_v41  ;;  %v8311_v43 = vpack.c.bf16 %v3179_v40, %v3176_v35  ;;  %v8327_v14 = vsub.f32 %v2474_v39, %v3176_v35  ;;  %v3297_v39 = vand.u32 4294901760, %v8155_v60 }
 0x580   : > { %6132 = vmatprep.subr.bf16.mxu1 %v8747_v13 }
 0x581   : > { %v3298_v40 = vsub.f32 %v8155_v60, %v3297_v39 }
 0x583   : > { %6134 = vmatpush3.bf16.msra.mxu1 %v7954_v62  ;;  %v8800_v62 = vand.u32 4294901760, %v8117_v23  ;;  %v3299_v45 = vand.u32 4294901760, %v3298_v40  ;;  %v6220_v40 = vpack.c.bf16 %v8088_v55, %v8083_v2 }
 0x584   : > { %6135 = vmatprep.subr.bf16.mxu1 %v8747_v13 }
 0x585   : > { %v8292_v41 = vpack.c.bf16 %v8800_v62, %v8799_v54  ;;  %v3290_v54 = vand.u32 4294901760, %v8136_v20 }
 0x587   : > { %6137 = vmatpush3.bf16.msra.mxu1 %v7956_v47  ;;  %v8257_v47 = vpack.c.bf16 %v3137_v57, %v3134_v24  ;;  %v3173_v24 = vand.u32 4294901760, %v2473_v56 }
 0x588   : > { %6138 = vmatprep.subr.bf16.mxu1 %v8747_v13 }
 0x589   : > { %v8325_v9 = vsub.f32 %v2473_v56, %v3173_v24  ;;  %v3291_v56 = vsub.f32 %v8136_v20, %v3290_v54 }
 0x58b   : > { %6140 = vmatpush3.bf16.msra.mxu1 %v7962_v49  ;;  %v2472_v49 = vld [vmem:[#allocation10 + $0x60] sm:$0xff]  ;;  %v3318_v0 = vand.u32 4294901760, %v8325_v9 }
 0x58c   : > { %6141 = vmatprep.subr.bf16.mxu1 %v8747_v13  ;;  %v3170_v28 = vand.u32 4294901760, %v2472_v49 }
 0x58d   : > { %v3319_v58 = vsub.f32 %v8325_v9, %v3318_v0 }
 0x58e   : > { %5342 = vmatmul.mubr.f32.vlgmr.msra.gmra.mrb[2].mxu1 %v7181_v31  ;;  %v8305_v57 = vpack.c.bf16 %v3173_v24, %v3170_v28  ;;  %v8323_v42 = vsub.f32 %v2472_v49, %v3170_v28  ;;  %v3292_v24 = vand.u32 4294901760, %v3291_v56 }
 0x58f   : > { %6143 = vmatpush3.bf16.msra.mxu1 %v8785_v6  ;;  %5376 = vmatprep.mubr.msk.f32.mxu1 %vm6791_vm0, %v8755_v38  ;;  %v3262_v6 = vand.u32 4294901760, %v8088_v55 }
 0x590   : > { %6144 = vmatprep.subr.bf16.mxu1 %v8747_v13 }
 0x593   : > { %6146 = vmatpush3.bf16.msra.mxu1 %v8787_v46  ;;  %v3256_v46 = vsub.f32 %v8083_v2, %v3255_v44 }
 0x594   : > { %6147 = vmatprep.subr.bf16.mxu1 %v8747_v13 }
 0x597   : > { %6149 = vmatpush3.bf16.msra.mxu1 %v8788_v17  ;;  %v3263_v17 = vsub.f32 %v8088_v55, %v3262_v6 }
 0x598   : > { %6150 = vmatprep.subr.bf16.mxu1 %v8747_v13 }
 0x59b   : > { %6152 = vmatpush3.bf16.msra.mxu1 %v8789_v37  ;;  %v3257_v37 = vand.u32 4294901760, %v3256_v46 }
 0x59c   : > { %6153 = vmatprep.subr.bf16.mxu1 %v8747_v13 }
 0x59f   : > { %6155 = vmatpush3.bf16.msra.mxu1 %v8790_v1  ;;  %v3264_v1 = vand.u32 4294901760, %v3263_v17  ;;  %v3320_v17 = vand.u32 4294901760, %v3319_v58  ;;  %v6235_v58 = vpack.c.bf16 %v8329_v18, %v8327_v14 }
 0x5a0   : > { %6156 = vmatprep.subr.bf16.mxu1 %v8747_v13 }
 0x5a1   : > { %v6196_v12 = vpack.c.bf16 %v3264_v1, %v3257_v37  ;;  %v3325_v37 = vand.u32 4294901760, %v8327_v14  ;;  %v8684_v1 = vand.u32 4294901760, %v8329_v18 }
 0x5a3   : > { %6158 = vmatpush3.bf16.msra.mxu1 %v8791_v26  ;;  %v3269_v26 = vand.u32 4294901760, %v8107_v34 }
 0x5a4   : > { %6159 = vmatprep.subr.bf16.mxu1 %v8747_v13 }
 0x5a5   : > { %v3270_v48 = vsub.f32 %v8107_v34, %v3269_v26 }
 0x5a7   : > { %6161 = vmatpush3.bf16.msra.mxu1 %v8792_v36  ;;  %v3276_v36 = vand.u32 4294901760, %v8112_v63 }
 0x5a8   : > { %6162 = vmatprep.subr.bf16.mxu1 %v8747_v13 }
 0x5ab   : > { %6164 = vmatpush3.bf16.msra.mxu1 %v7915_v53  ;;  %v8798_v53 = vand.u32 4294901760, %v8093_v4  ;;  %v3228_v4 = vsub.f32 %v8038_v61, %v3227_v30 }
 0x5ac   : > { %6165 = vmatprep.subr.bf16.mxu1 %v8747_v13 }
 0x5ad   : > { %v8284_v16 = vpack.c.bf16 %v8798_v53, %v8797_v33  ;;  %v3229_v23 = vand.u32 4294901760, %v3228_v4  ;;  %v3283_v53 = vand.u32 4294901760, %v8131_v11  ;;  %v3305_v4 = vsub.f32 %v8160_v50, %v3304_v27 }
 0x5ae   : > { %5377 = vmatmul.mubr.f32.vlgmr.msra.gmra.mrb[2].mxu1 %v7181_v31  ;;  %v8276_v31 = vpack.c.bf16 %v8796_v15, %v8795_v21  ;;  %v3277_v21 = vsub.f32 %v8112_v63, %v3276_v36  ;;  %v3271_v15 = vand.u32 4294901760, %v3270_v48 }
 0x5af   : > { %6167 = vmatpush3.bf16.msra.mxu1 %v8257_v47  ;;  %5411 = vmatprep.mubr.msk.f32.mxu1 %vm6791_vm0, %v8755_v38  ;;  %v8331_v32 = vpack.c.bf16 %v3236_v52, %v3229_v23  ;;  %v3284_v49 = vsub.f32 %v8131_v11, %v3283_v53  ;;  %v3306_v23 = vand.u32 4294901760, %v3305_v4  ;;  %v3311_v52 = vand.u32 4294901760, %v8323_v42 }
 0x5b0   : > { %6168 = vmatprep.subr.bf16.mxu1 %v8747_v13  ;;  %v3278_v33 = vand.u32 4294901760, %v3277_v21  ;;  %v3326_v21 = vsub.f32 %v8327_v14, %v3325_v37  ;;  %v6223_v4 = vpack.c.bf16 %v8112_v63, %v8107_v34 }
 0x5b1   : > { %v3285_v28 = vand.u32 4294901760, %v3284_v49  ;;  %v6205_v19 = vpack.c.bf16 %v3306_v23, %v3299_v45  ;;  %v3312_v10 = vsub.f32 %v8323_v42, %v3311_v52  ;;  %v6226_v45 = vpack.c.bf16 %v8136_v20, %v8131_v11 }
 0x5b2   : > { %v6199_v62 = vpack.c.bf16 %v3278_v33, %v3271_v15  ;;  %v3333_v15 = vsub.f32 %v8329_v18, %v8684_v1  ;;  %v3327_v33 = vand.u32 4294901760, %v3326_v21  ;;  %v6229_v23 = vpack.c.bf16 %v8160_v50, %v8155_v60 }
 0x5b3   : > { %6170 = vmatpush3.bf16.msra.mxu1 %v8266_v29  ;;  %v6202_v35 = vpack.c.bf16 %v3292_v24, %v3285_v28  ;;  %v3313_v46 = vand.u32 4294901760, %v3312_v10  ;;  %v6214_v28 = vpack.c.bf16 %v8043_v3, %v8038_v61  ;;  %v6217_v24 = vpack.c.bf16 %v8065_v7, %v8059_v51 }
 0x5b4   : > { %6171 = vmatprep.subr.bf16.mxu1 %v8747_v13  ;;  %v3334_v49 = vand.u32 4294901760, %v3333_v15  ;;  %v6232_v10 = vpack.c.bf16 %v8325_v9, %v8323_v42  ;;  %v6268_v61 = vpack.c.bf16 %v3262_v6, %v3255_v44  ;;  %v6271_v3 = vpack.c.bf16 %v3276_v36, %v3269_v26 }
 0x5b5   : > { %v6208_v48 = vpack.c.bf16 %v3320_v17, %v3313_v46  ;;  %v6274_v51 = vpack.c.bf16 %v3290_v54, %v3283_v53  ;;  %v6277_v7 = vpack.c.bf16 %v3304_v27, %v3297_v39  ;;  %v6280_v2 = vpack.c.bf16 %v3318_v0, %v3311_v52 }
 0x5b6   : > { %v6211_v56 = vpack.c.bf16 %v3334_v49, %v3327_v33  ;;  %v8801_v11 = vand.u32 4294901760, %v8329_v18 }
 0x5b7   : > { %6173 = vmatpush3.bf16.msra.mxu1 %v8276_v31 }
 0x5b8   : > { %6174 = vmatprep.subr.bf16.mxu1 %v8747_v13  ;;  %v6283_v55 = vpack.c.bf16 %v8801_v11, %v3325_v37 }
 0x5bb   : > { %6176 = vmatpush3.bf16.msra.mxu1 %v8284_v16 }
 0x5bc   : > { %6177 = vmatprep.subr.bf16.mxu1 %v8747_v13 }
 0x5bf   : > { %6179 = vmatpush3.bf16.msra.mxu1 %v8292_v41 }
 0x5c0   : > { %6180 = vmatprep.subr.bf16.mxu1 %v8747_v13 }
 0x5c3   : > { %6182 = vmatpush3.bf16.msra.mxu1 %v8300_v8 }
 0x5c4   : > { %6183 = vmatprep.subr.bf16.mxu1 %v8747_v13 }
 0x5c7   : > { %6185 = vmatpush3.bf16.msra.mxu1 %v8305_v57 }
 0x5c8   : > { %6186 = vmatprep.subr.bf16.mxu1 %v8747_v13 }
 0x5cb   : > { %6188 = vmatpush3.bf16.msra.mxu1 %v8311_v43 }
 0x5cc   : > { %6189 = vmatprep.subr.bf16.mxu1 %v8747_v13 }
 0x648   : > { %v2456_v46 = vpop.f32.mrb[4].mxu0 }
 0x649   : > { %v8403_v17 = vand.u32 4294901760, %v2456_v46  ;;  %v5168_v21 = vpop.f32.mrb[5].mxu0 }
 0x64b   : > { %v3215_v15 = vsub.f32 %v2456_v46, %v8403_v17 }
 0x64d   : > { %v3216_v33 = vand.u32 4294901760, %v3215_v15 }
 0x64f   : > { %v3217_v49 = vsub.f32 %v3215_v15, %v3216_v33 }
 0x651   : > { %v3218_v1 = vand.u32 4294901760, %v3217_v49 }
 0x653   : > { %5412 = vmatmul.mubr.f32.vlgmr.msra.gmra.mrb[2].mxu1 %v3218_v1 }
 0x654   : > { %6191 = vmatpush3.bf16.msra.mxu1 %v8331_v32  ;;  %5446 = vmatprep.mubr.msk.f32.mxu1 %vm6791_vm0, %v8755_v38  ;;  %v6262_v32 = vpack.c.bf16 %v3234_v59, %v3227_v30 }
 0x655   : > { %6192 = vmatprep.subr.bf16.mxu1 %v8747_v13 }
 0x658   : > { %6194 = vmatpush3.bf16.msra.mxu1 %v6193_v25  ;;  %v6265_v25 = vpack.c.bf16 %v3248_v22, %v3241_v5 }
 0x659   : > { %6195 = vmatprep.subr.bf16.mxu1 %v8747_v13 }
 0x65c   : > { %6197 = vmatpush3.bf16.msra.mxu1 %v6196_v12 }
 0x65d   : > { %6198 = vmatprep.subr.bf16.mxu1 %v8747_v13 }
 0x660   : > { %6200 = vmatpush3.bf16.msra.mxu1 %v6199_v62 }
 0x661   : > { %6201 = vmatprep.subr.bf16.mxu1 %v8747_v13 }
 0x664   : > { %6203 = vmatpush3.bf16.msra.mxu1 %v6202_v35 }
 0x665   : > { %6204 = vmatprep.subr.bf16.mxu1 %v8747_v13 }
 0x668   : > { %6206 = vmatpush3.bf16.msra.mxu1 %v6205_v19 }
 0x669   : > { %6207 = vmatprep.subr.bf16.mxu1 %v8747_v13 }
 0x66c   : > { %6209 = vmatpush3.bf16.msra.mxu1 %v6208_v48 }
 0x66d   : > { %6210 = vmatprep.subr.bf16.mxu1 %v8747_v13 }
 0x670   : > { %6212 = vmatpush3.bf16.msra.mxu1 %v6211_v56 }
 0x671   : > { %6213 = vmatprep.subr.bf16.mxu1 %v8747_v13 }
 0x673   : > { %5447 = vmatmul.mubr.f32.vlgmr.msra.gmra.mrb[2].mxu1 %v8403_v17 }
 0x674   : > { %6215 = vmatpush3.bf16.msra.mxu1 %v6214_v28  ;;  %5481 = vmatprep.mubr.msk.f32.mxu1 %vm6791_vm0, %v8755_v38 }
 0x675   : > { %6216 = vmatprep.subr.bf16.mxu1 %v8747_v13 }
 0x678   : > { %6218 = vmatpush3.bf16.msra.mxu1 %v6217_v24 }
 0x679   : > { %6219 = vmatprep.subr.bf16.mxu1 %v8747_v13 }
 0x67c   : > { %6221 = vmatpush3.bf16.msra.mxu1 %v6220_v40 }
 0x67d   : > { %6222 = vmatprep.subr.bf16.mxu1 %v8747_v13 }
 0x680   : > { %6224 = vmatpush3.bf16.msra.mxu1 %v6223_v4 }
 0x681   : > { %6225 = vmatprep.subr.bf16.mxu1 %v8747_v13 }
 0x684   : > { %6227 = vmatpush3.bf16.msra.mxu1 %v6226_v45 }
 0x685   : > { %6228 = vmatprep.subr.bf16.mxu1 %v8747_v13 }
 0x688   : > { %6230 = vmatpush3.bf16.msra.mxu1 %v6229_v23 }
 0x689   : > { %6231 = vmatprep.subr.bf16.mxu1 %v8747_v13 }
 0x68c   : > { %6233 = vmatpush3.bf16.msra.mxu1 %v6232_v10 }
 0x68d   : > { %6234 = vmatprep.subr.bf16.mxu1 %v8747_v13 }
 0x690   : > { %6236 = vmatpush3.bf16.msra.mxu1 %v6235_v58 }
 0x691   : > { %6237 = vmatprep.subr.bf16.mxu1 %v8747_v13 }
 0x693   : > { %5482 = vmatmul.mubr.f32.vlgmr.msra.gmra.mrb[2].mxu1 %v3215_v15 }
 0x694   : > { %6239 = vmatpush3.bf16.msra.mxu1 %v8257_v47  ;;  %5516 = vmatprep.mubr.msk.f32.mxu1 %vm6791_vm0, %v8755_v38 }
 0x695   : > { %6240 = vmatprep.subr.bf16.mxu1 %v8747_v13 }
 0x698   : > { %6242 = vmatpush3.bf16.msra.mxu1 %v8266_v29 }
 0x699   : > { %6243 = vmatprep.subr.bf16.mxu1 %v8747_v13 }
 0x69c   : > { %6245 = vmatpush3.bf16.msra.mxu1 %v8276_v31 }
 0x69d   : > { %6246 = vmatprep.subr.bf16.mxu1 %v8747_v13 }
 0x6a0   : > { %6248 = vmatpush3.bf16.msra.mxu1 %v8284_v16 }
 0x6a1   : > { %6249 = vmatprep.subr.bf16.mxu1 %v8747_v13 }
 0x6a4   : > { %6251 = vmatpush3.bf16.msra.mxu1 %v8292_v41 }
 0x6a5   : > { %6252 = vmatprep.subr.bf16.mxu1 %v8747_v13 }
 0x6a8   : > { %6254 = vmatpush3.bf16.msra.mxu1 %v8300_v8 }
 0x6a9   : > { %6255 = vmatprep.subr.bf16.mxu1 %v8747_v13 }
 0x6ac   : > { %6257 = vmatpush3.bf16.msra.mxu1 %v8305_v57 }
 0x6ad   : > { %6258 = vmatprep.subr.bf16.mxu1 %v8747_v13 }
 0x6b0   : > { %6260 = vmatpush3.bf16.msra.mxu1 %v8311_v43 }
 0x6b1   : > { %6261 = vmatprep.subr.bf16.mxu1 %v8747_v13 }
 0x6b3   : > { %5517 = vmatmul.mubr.f32.vlgmr.msra.gmra.mrb[2].mxu1 %v3216_v33 }
 0x6b4   : > { %6263 = vmatpush3.bf16.msra.mxu1 %v6262_v32  ;;  %5551 = vmatprep.mubr.msk.f32.mxu1 %vm6791_vm0, %v8755_v38 }
 0x6b5   : > { %6264 = vmatprep.subr.bf16.mxu1 %v8747_v13 }
 0x6b8   : > { %6266 = vmatpush3.bf16.msra.mxu1 %v6265_v25 }
 0x6b9   : > { %6267 = vmatprep.subr.bf16.mxu1 %v8747_v13 }
 0x6bc   : > { %6269 = vmatpush3.bf16.msra.mxu1 %v6268_v61 }
 0x6bd   : > { %6270 = vmatprep.subr.bf16.mxu1 %v8747_v13 }
 0x6c0   : > { %6272 = vmatpush3.bf16.msra.mxu1 %v6271_v3 }
 0x6c1   : > { %6273 = vmatprep.subr.bf16.mxu1 %v8747_v13 }
 0x6c4   : > { %6275 = vmatpush3.bf16.msra.mxu1 %v6274_v51 }
 0x6c5   : > { %6276 = vmatprep.subr.bf16.mxu1 %v8747_v13 }
 0x6c8   : > { %6278 = vmatpush3.bf16.msra.mxu1 %v6277_v7 }
 0x6c9   : > { %6279 = vmatprep.subr.bf16.mxu1 %v8747_v13 }
 0x6cc   : > { %6281 = vmatpush3.bf16.msra.mxu1 %v6280_v2 }
 0x6cd   : > { %6282 = vmatprep.subr.bf16.mxu1 %v8747_v13 }
 0x6d0   : > { %6284 = vmatpush3.bf16.msra.mxu1 %v6283_v55 }
 0x6d1   : > { %6285 = vmatprep.subr.bf16.mxu1 %v8747_v13 }
 0x6d3   : > { %5552 = vmatmul.mubr.f32.vlgmr.msra.gmra.mrb[2].mxu1 %v8403_v17 }
 0x6d4   : > { %6287 = vmatpush3.bf16.msra.mxu1 %v8257_v47  ;;  %5586 = vmatprep.mubr.msk.f32.mxu1 %vm6791_vm0, %v8755_v38 }
 0x6d5   : > { %6288 = vmatprep.subr.bf16.mxu1 %v8747_v13 }
 0x6d8   : > { %6290 = vmatpush3.bf16.msra.mxu1 %v8266_v29 }
 0x6d9   : > { %6291 = vmatprep.subr.bf16.mxu1 %v8747_v13 }
 0x6dc   : > { %6293 = vmatpush3.bf16.msra.mxu1 %v8276_v31 }
 0x6dd   : > { %6294 = vmatprep.subr.bf16.mxu1 %v8747_v13 }
 0x6e0   : > { %6296 = vmatpush3.bf16.msra.mxu1 %v8284_v16 }
 0x6e1   : > { %6297 = vmatprep.subr.bf16.mxu1 %v8747_v13 }
 0x6e4   : > { %6299 = vmatpush3.bf16.msra.mxu1 %v8292_v41 }
 0x6e5   : > { %6300 = vmatprep.subr.bf16.mxu1 %v8747_v13 }
 0x6e8   : > { %6302 = vmatpush3.bf16.msra.mxu1 %v8300_v8 }
 0x6e9   : > { %6303 = vmatprep.subr.bf16.mxu1 %v8747_v13 }
 0x6ec   : > { %6305 = vmatpush3.bf16.msra.mxu1 %v8305_v57 }
 0x6ed   : > { %6306 = vmatprep.subr.bf16.mxu1 %v8747_v13 }
 0x6f0   : > { %6308 = vmatpush3.bf16.msra.mxu1 %v8311_v43 }
 0x6f3   : > { %5587 = vmatmul.mubr.f32.vlgmr.msra.gmra.mrb[2].mxu1 %v8403_v17 }
 0x6f4   : > { %6667 = shalt.err (!%p6664_p8)
}
 0x6f5   : > { %s6668_s23 = scalar_lea.hbm %s8513_s1, 128  ;;  %s6672_s30 = scalar_lea.hbm %s8804_s22, 256 }
 0x6f6   : > { %p6669_p10 = scmp.ne.s32.totalorder %s8513_s1, %s6668_s23  ;;  %p6673_p5 = scmp.lt.u32.totalorder %s8513_s1, %s8804_s22 }
 0x6f7   : > { %p6674_p12 = scmp.lt.u32.totalorder %s6672_s30, %s6668_s23  ;;  %p6676_p4 = scmp.lt.u32.totalorder %s6668_s23, %s8513_s1 }
 0x6f8   : > { %p6670_p11 = pnand %p6669_p10, %p8805_p9 }
 0x6f9   : > { %p6675_p1 = por %p6674_p12, %p6673_p5 }
 0x6fa   : > { %p6671_p13 = pneg %p6670_p11 }
 0x6fb   : > { %p6677_p7 = por %p6676_p4, %p6675_p1 }
 0x6fd   : > { %p6678_p2 = pnand %p6677_p7, %p6671_p13 }
 0x6ff   : > { %6681 = shalt.err (!%p6678_p2)
}
 0x700   : > { %6380 = dma.vmem_to_hbm [thread:$0]  (%p8805_p9), %s3812_s24, 128, %s8513_s1, %s3783_s14  }
 0x701   : > { %s464_s11 = scalar_lea.vmem [#allocation13], %s7129_s3  ;;  %s8806_s21 = sld [smem:[#allocation54_spill]] }
 0x702   : > { %s3797_s15 = sshll.u32 %s464_s11, 4  ;;  %s3778_s27 = scalar_lea.sflag [#allocation4], %s7126_s20  ;;  %s8543_s15 = int_to_ptr.vmem [resolvable:$true] %s3797_s15 }
 0x703   : > { %s6682_s1 = scalar_lea.vmem %s8543_s15, 128  ;;  %s6794_s3 = smov [#allocation13]  }
 0x704   : > { %p6683_p0 = scmp.ne.s32.totalorder %s8543_s15, %s6682_s1  ;;  %s6686_s17 = sshll.u32 %s6794_s3, 4  ;;  %s6687_s17 = int_to_ptr.vmem [resolvable:$false] %s6686_s17 }
 0x705   : > { %s6688_s24 = scalar_lea.vmem %s6687_s17, 256  ;;  %p6689_p8 = scmp.lt.s32.totalorder %s8543_s15, %s6687_s17 }
 0x706   : > { %p6684_p6 = pnand %p6683_p0, %p8805_p9  ;;  %p6690_p10 = scmp.lt.s32.totalorder %s6688_s24, %s6682_s1 }
 0x707   : > { %s8541_s25 = scalar_lea.hbm %s8806_s21, %s4023_s19 }
 0x708   : > { %p6685_p3 = pneg %p6684_p6  ;;  %p6691_p11 = por %p6690_p10, %p6689_p8 }
 0x70a   : > { %p6692_p13 = pnand %p6691_p11, %p6685_p3 }
 0x7c6   : > { %v3770_v13 = vpop.f32.mrb[2].mxu1 }
 0x7c7   : > { %6478 = vtanh.f32 %v3770_v13  ;;  %v5588_v38 = vpop.f32.mrb[3].mxu1 }
 0x7d1   : > { %v6479_v60 = vpop.eup %6478 }
 0x7d2   : > { %3775 = vst [vmem:[%s464_s11] sm:$0xff] %v6479_v60 }
 0x7d3   : > { %6695 = shalt.err (!%p6692_p13)
}
 0x7d4   : > { %s6696_s20 = scalar_lea.hbm %s8541_s25, 128  ;;  %s6700_s26 = scalar_lea.hbm %s8806_s21, 256 }
 0x7d5   : > { %p6697_p5 = scmp.ne.s32.totalorder %s8541_s25, %s6696_s20  ;;  %p6701_p4 = scmp.lt.u32.totalorder %s8541_s25, %s8806_s21 }
 0x7d6   : > { %p6702_p7 = scmp.lt.u32.totalorder %s6700_s26, %s6696_s20  ;;  %p6704_p0 = scmp.lt.u32.totalorder %s6696_s20, %s8541_s25 }
 0x7d7   : > { %p6698_p12 = pnand %p6697_p5, %p8805_p9 }
 0x7d8   : > { %p6703_p2 = por %p6702_p7, %p6701_p4 }
 0x7d9   : > { %p6699_p1 = pneg %p6698_p12 }
 0x7da   : > { %p6705_p6 = por %p6704_p0, %p6703_p2 }
 0x7dc   : > { %p6706_p3 = pnand %p6705_p6, %p6699_p1 }
 0x7de   : > { %6709 = shalt.err (!%p6706_p3)
}
 0x7df   : > { %6379 = dma.vmem_to_hbm [thread:$0]  (%p8805_p9), %s8543_s15, 128, %s8541_s25, %s3778_s27  }
 0x7e0 PF: > { %s8807_s23 = sld [smem:[#allocation22_spill]]  ;;  %s8808_s18 = sld [smem:[#allocation27_spill]] }
 0x7e1   : > { %s8809_s7 = sld [smem:[#allocation25_spill]] }
 0x7e6   : > { %s3823_s30 = sand.u32 1, %s8807_s23   ;;  %p8810_p8 = scmp.ne.s32.totalorder %s8808_s18, 0 }
 0x7e7   : > { %p8811_p10 = scmp.ge.s32.totalorder %s8809_s7, 2  ;;  %s3824_s4 = scalar_lea.sflag [#allocation4], %s3823_s30 }
 0x7e9   : > { %p6404_p11 = pnand %p8811_p10, %p8810_p8 }
 0x7eb   : > { %6751 = dma.done.wait (!%p6404_p11), %s3824_s4, 128  }
 0x7ec   : > { %6753 = vsyncadd (!%p6404_p11), %s3824_s4, 4294967168  ;;  %s3833_s8 = scalar_lea.sflag [#allocation15], %s3823_s30 }
 0x7ed   : > { %6755 = dma.done.wait (!%p6404_p11), %s3833_s8, 128  }
 0x7ee   : > { %6757 = vsyncadd (!%p6404_p11), %s3833_s8, 4294967168  ;;  %s33_s10 = sadd.s32 1, %s8809_s7   ;;  %s8812_s29 = sld [smem:[#allocation23_spill]] }
 0x7ef   : > { %p30_p13 = scmp.ge.s32.totalorder %s33_s10, 4   ;;  %s8813_s11 = sld [smem:[#allocation29_spill]] }
 0x7f0   : > { %s8814_s15 = sld [smem:[#allocation28_spill]]  ;;  %s8815_s27 = smov %s6764_s28 }
 0x7f1   : > { %s8818_s30 = smov %s6776_s9  ;;  %32 = sbr.rel (!%p30_p13) target bundleno = 18 (0x12), region = 146 }
 0x7f4   : > { %s8816_s28 = smov %s8812_s29 }
 0x7f5   : > { %s8817_s29 = smov %s8813_s11 }
 0x7f6   : > { %s8819_s9 = smov %s8814_s15 }
 0x7f8   :  { %3838 = vsyncpa [#allocation3], 1 }
 0x7f9   :  { %3840 = vsyncpa [#allocation3 + $0x1], 1 }
 0x7fa   :  { %3841 = vsyncpa [#allocation6], 1 }
 0x7fb   :  { %3843 = vsyncpa [#allocation6 + $0x1], 1 }
 0x7fc   :  { %3844 = vsyncpa [#allocation9], 1 }
 0x7fd   :  { %3845 = vsyncpa [#allocation12], 1 }
 0x7fe   :  { %3846 = vsyncpa [#allocation4], 1 }
 0x7ff   :  { %3848 = vsyncpa [#allocation4 + $0x1], 1 }
 0x800   :  { %3849 = vsyncpa [#allocation15], 1 }
 0x801   :  { %3851 = vsyncpa [#allocation15 + $0x1], 1 }

</bundles_post_ra>
